<compile_context>
chip_gen: v5e
topology: v5e:2x2
jax: 0.10.0
libtpu: 0.0.40
codegen_flags: <defaults>
</compile_context>

<pallas_src>
import math

import jax
import jax.numpy as jnp
from jax.experimental import pallas as pl
from jax.experimental.pallas import tpu as pltpu

SUBLANE = 8      # batch padded to full sublane width
OUT_LANES = 128  # lane-dense output width


def make_fused_lstm_kernel(num_layers, Bp, T, H):
    """Kernel fusing `num_layers` wavefronted LSTM layers + the (H, 6) head.

    Ref order:
      in : xg0 (T*Bp, 4H)                       -- layer-0 gates, time-major
           for layer 1..L-1: wih_t (H, 4H), b (1, 4H)
           for layer 0..L-1: whh_t (H, 4H)
           head_w_pad (H, 128), head_b_pad (1, 128)
      out: out (Bp, 128)
    """

    def kernel(*refs):
        idx = 0
        xg0_ref = refs[idx]; idx += 1
        wih_refs, b_refs = [], []
        for _ in range(num_layers - 1):
            wih_refs.append(refs[idx]); b_refs.append(refs[idx + 1]); idx += 2
        whh_refs = [refs[idx + l] for l in range(num_layers)]
        idx += num_layers
        head_w_ref = refs[idx]
        head_b_ref = refs[idx + 1]
        out_ref = refs[idx + 2]

        # Hoist loop-invariant weight loads out of the unrolled time loop.
        whh = [whh_refs[l][...] for l in range(num_layers)]
        wih = [wih_refs[l][...] for l in range(num_layers - 1)]
        bias = [b_refs[l][...] for l in range(num_layers - 1)]

        h = [jnp.zeros((Bp, H), jnp.float32) for _ in range(num_layers)]
        c = [jnp.zeros((Bp, H), jnp.float32) for _ in range(num_layers)]

        for t in range(T):            # small & static -> fully unrolled
            for l in range(num_layers):
                if l == 0:
                    # Precomputed (sublane-aligned) row block for this step.
                    xg = xg0_ref[t * Bp:(t + 1) * Bp, :]
                else:
                    # Layer-l input projection from the fresh h of layer l-1:
                    # off layer-l's recurrent critical path, lands on idle MXU.
                    xg = jnp.dot(h[l - 1], wih[l - 1],
                                 preferred_element_type=jnp.float32) + bias[l - 1]
                gates = xg + jnp.dot(h[l], whh[l],
                                     preferred_element_type=jnp.float32)  # (Bp, 4H)
                sig = jax.nn.sigmoid(gates)
                i_g = sig[:, 0 * H:1 * H]
                f_g = sig[:, 1 * H:2 * H]
                o_g = sig[:, 3 * H:4 * H]
                g_g = jnp.tanh(gates[:, 2 * H:3 * H])
                c[l] = f_g * c[l] + i_g * g_g
                h[l] = o_g * jnp.tanh(c[l])

        # Fused (fc_initial_conditions || fc_parameters) head, lane-dense store.
        out_ref[...] = (
            jnp.dot(h[num_layers - 1], head_w_ref[...],
                    preferred_element_type=jnp.float32)
            + head_b_ref[...]
        )

    return kernel


def lstm_forward(x, params):
    B, T, Din = x.shape
    H = params["lstm"][0]["whh_t"].shape[0]
    num_layers = len(params["lstm"])
    n_out = params["head_w"].shape[1]
    Bp = max(SUBLANE, B)

    # Pad batch to the sublane width; padded rows are zeros and are sliced off.
    x_pad = jnp.zeros((Bp, T, Din), x.dtype).at[:B].set(x)
    # Time-major flatten: row t*Bp + b corresponds to (b, t).
    x2d = jnp.transpose(x_pad, (1, 0, 2)).reshape(T * Bp, Din)

    # Layer-0 input projection done by XLA outside the kernel (K=3 is trivial).
    lp0 = params["lstm"][0]
    xg0 = x2d @ lp0["wih_t"] + lp0["b"]          # (T*Bp, 4H) f32

    inputs = [xg0]
    for lp in params["lstm"][1:]:
        inputs += [lp["wih_t"], lp["b"]]
    for lp in params["lstm"]:
        inputs += [lp["whh_t"]]
    head_w_pad = jnp.zeros((H, OUT_LANES), jnp.float32).at[:, :n_out].set(params["head_w"])
    head_b_pad = jnp.zeros((1, OUT_LANES), jnp.float32).at[:, :n_out].set(params["head_b"])
    inputs += [head_w_pad, head_b_pad]

    vmem = pl.BlockSpec(memory_space=pltpu.MemorySpace.VMEM)
    kernel = make_fused_lstm_kernel(num_layers, Bp, T, H)
    out_pad = pl.pallas_call(
        kernel,
        out_shape=jax.ShapeDtypeStruct((Bp, OUT_LANES), jnp.float32),
        in_specs=[vmem] * len(inputs),
        out_specs=vmem,
    )(*inputs)
    return out_pad[:B, :n_out]


def init_params(key, hidden_size, layers, input_size=3):
    """Deterministic PyTorch-style uniform(-k, k) init for all parameters."""
    params = {"lstm": []}
    k_lstm = 1.0 / math.sqrt(hidden_size)
    for layer in range(layers):
        d_in = input_size if layer == 0 else hidden_size
        key, k1, k2, k3, k4 = jax.random.split(key, 5)
        wih = jax.random.uniform(k1, (4 * hidden_size, d_in), jnp.float32, -k_lstm, k_lstm)
        whh = jax.random.uniform(k2, (4 * hidden_size, hidden_size), jnp.float32, -k_lstm, k_lstm)
        bih = jax.random.uniform(k3, (4 * hidden_size,), jnp.float32, -k_lstm, k_lstm)
        bhh = jax.random.uniform(k4, (4 * hidden_size,), jnp.float32, -k_lstm, k_lstm)
        params["lstm"].append(
            {
                "wih_t": wih.T,                                   # (D_in, 4H)
                "whh_t": whh.T,                                   # (H, 4H)
                "b": (bih + bhh).reshape(1, 4 * hidden_size),     # (1, 4H)
            }
        )
    k_fc = 1.0 / math.sqrt(hidden_size)
    key, k1, k2, k3, k4 = jax.random.split(key, 5)
    w_ic = jax.random.uniform(k1, (3, hidden_size), jnp.float32, -k_fc, k_fc)
    b_ic = jax.random.uniform(k2, (3,), jnp.float32, -k_fc, k_fc)
    w_pp = jax.random.uniform(k3, (3, hidden_size), jnp.float32, -k_fc, k_fc)
    b_pp = jax.random.uniform(k4, (3,), jnp.float32, -k_fc, k_fc)
    # Fused heads: cat along output dim reproduces torch.cat((x1, x2), dim=1).
    params["head_w"] = jnp.concatenate([w_ic, w_pp], axis=0).T   # (H, 6)
    params["head_b"] = jnp.concatenate([b_ic, b_pp]).reshape(1, 6)
    return params


def reference_forward(x, params):
    """Pure-JAX reference mirroring PyTorch nn.LSTM + the two FC heads."""
    seq = x
    for lp in params["lstm"]:
        H = lp["whh_t"].shape[0]
        B, T, _ = seq.shape
        h = jnp.zeros((B, H), jnp.float32)
        c = jnp.zeros((B, H), jnp.float32)
        outs = []
        for t in range(T):
            gates = seq[:, t, :] @ lp["wih_t"] + lp["b"] + h @ lp["whh_t"]
            i_g = jax.nn.sigmoid(gates[:, 0 * H:1 * H])
            f_g = jax.nn.sigmoid(gates[:, 1 * H:2 * H])
            g_g = jnp.tanh(gates[:, 2 * H:3 * H])
            o_g = jax.nn.sigmoid(gates[:, 3 * H:4 * H])
            c = f_g * c + i_g * g_g
            h = o_g * jnp.tanh(c)
            outs.append(h)
        seq = jnp.stack(outs, axis=1)
    last = seq[:, -1, :]
    return last @ params["head_w"] + params["head_b"]


if __name__ == "__main__":
    hidden_size = 32
    layers = 2
    B, T, D = 2, 8, 3

    key = jax.random.PRNGKey(0)
    k_params, k_x = jax.random.split(key)
    params = init_params(k_params, hidden_size, layers, input_size=D)
    x = jax.random.normal(k_x, (B, T, D), dtype=jnp.float32)

    forward = jax.jit(lstm_forward)
    out = forward(x, params)
    jax.block_until_ready(out)
    assert out.shape == (B, 6), out.shape

    ref = reference_forward(x, params)
    assert jnp.allclose(out, ref, atol=2e-2, rtol=2e-2), (out, ref)
    print("KERNEL_OK")
</pallas_src>

<mosaic_0001>
module attributes {stable_mosaic.version = 11 : i64} {
  func.func @kernel(%arg0: memref<64x128xf32, #tpu.memory_space<vmem>>, %arg1: memref<32x128xf32, #tpu.memory_space<vmem>>, %arg2: memref<1x128xf32, #tpu.memory_space<vmem>>, %arg3: memref<32x128xf32, #tpu.memory_space<vmem>>, %arg4: memref<32x128xf32, #tpu.memory_space<vmem>>, %arg5: memref<32x128xf32, #tpu.memory_space<vmem>>, %arg6: memref<1x128xf32, #tpu.memory_space<vmem>>, %arg7: memref<8x128xf32, #tpu.memory_space<vmem>>) attributes {dimension_semantics = [], scalar_prefetch = 0 : i64, scratch_operands = 0 : i64, tpu.core_type = #tpu.core_type<tc>} {
    %c0 = arith.constant 0 : index
    %c0_0 = arith.constant 0 : index
    %0 = vector.load %arg3[%c0, %c0_0] : memref<32x128xf32, #tpu.memory_space<vmem>>, vector<32x128xf32>
    %c0_1 = arith.constant 0 : index
    %c0_2 = arith.constant 0 : index
    %1 = vector.load %arg4[%c0_1, %c0_2] : memref<32x128xf32, #tpu.memory_space<vmem>>, vector<32x128xf32>
    %c0_3 = arith.constant 0 : index
    %c0_4 = arith.constant 0 : index
    %2 = vector.load %arg1[%c0_3, %c0_4] : memref<32x128xf32, #tpu.memory_space<vmem>>, vector<32x128xf32>
    %c0_5 = arith.constant 0 : index
    %c0_6 = arith.constant 0 : index
    %3 = vector.load %arg2[%c0_5, %c0_6] : memref<1x128xf32, #tpu.memory_space<vmem>>, vector<1x128xf32>
    %cst = arith.constant 0.000000e+00 : f32
    %4 = vector.broadcast %cst : f32 to vector<8x32xf32>
    %cst_7 = arith.constant 0.000000e+00 : f32
    %5 = vector.broadcast %cst_7 : f32 to vector<8x32xf32>
    %cst_8 = arith.constant 0.000000e+00 : f32
    %6 = vector.broadcast %cst_8 : f32 to vector<8x32xf32>
    %cst_9 = arith.constant 0.000000e+00 : f32
    %7 = vector.broadcast %cst_9 : f32 to vector<8x32xf32>
    %c0_10 = arith.constant 0 : index
    %c0_11 = arith.constant 0 : index
    %8 = vector.load %arg0[%c0_10, %c0_11] : memref<64x128xf32, #tpu.memory_space<vmem>>, vector<8x128xf32>
    %cst_12 = arith.constant dense<0.000000e+00> : vector<8x128xf32>
    %9 = tpu.matmul %4, %0, %cst_12 {dimension_numbers = #tpu.dot_dimension_numbers<[1], [0], [0], [1], [0, 0, 1, 1], [], []>} : vector<8x32xf32>, vector<32x128xf32>, vector<8x128xf32> -> vector<8x128xf32>
    %10 = arith.addf %8, %9 : vector<8x128xf32>
    %11 = arith.negf %10 : vector<8x128xf32>
    %12 = math.exp %11 : vector<8x128xf32>
    %cst_13 = arith.constant 1.000000e+00 : f32
    %13 = vector.broadcast %cst_13 : f32 to vector<8x128xf32>
    %14 = arith.addf %13, %12 : vector<8x128xf32>
    %15 = arith.divf %13, %14 : vector<8x128xf32>
    %16 = vector.extract_strided_slice %15 {offsets = [0, 0], sizes = [8, 32], strides = [1, 1]} : vector<8x128xf32> to vector<8x32xf32>
    %17 = vector.extract_strided_slice %15 {offsets = [0, 32], sizes = [8, 32], strides = [1, 1]} : vector<8x128xf32> to vector<8x32xf32>
    %18 = vector.extract_strided_slice %15 {offsets = [0, 96], sizes = [8, 32], strides = [1, 1]} : vector<8x128xf32> to vector<8x32xf32>
    %19 = vector.extract_strided_slice %10 {offsets = [0, 64], sizes = [8, 32], strides = [1, 1]} : vector<8x128xf32> to vector<8x32xf32>
    %20 = math.tanh %19 : vector<8x32xf32>
    %21 = arith.mulf %17, %6 : vector<8x32xf32>
    %22 = arith.mulf %16, %20 : vector<8x32xf32>
    %23 = arith.addf %21, %22 : vector<8x32xf32>
    %24 = math.tanh %23 : vector<8x32xf32>
    %25 = arith.mulf %18, %24 : vector<8x32xf32>
    %cst_14 = arith.constant dense<0.000000e+00> : vector<8x128xf32>
    %26 = tpu.matmul %25, %2, %cst_14 {dimension_numbers = #tpu.dot_dimension_numbers<[1], [0], [0], [1], [0, 0, 1, 1], [], []>} : vector<8x32xf32>, vector<32x128xf32>, vector<8x128xf32> -> vector<8x128xf32>
    %27 = vector.broadcast %3 : vector<1x128xf32> to vector<8x128xf32>
    %28 = arith.addf %26, %27 : vector<8x128xf32>
    %cst_15 = arith.constant dense<0.000000e+00> : vector<8x128xf32>
    %29 = tpu.matmul %5, %1, %cst_15 {dimension_numbers = #tpu.dot_dimension_numbers<[1], [0], [0], [1], [0, 0, 1, 1], [], []>} : vector<8x32xf32>, vector<32x128xf32>, vector<8x128xf32> -> vector<8x128xf32>
    %30 = arith.addf %28, %29 : vector<8x128xf32>
    %31 = arith.negf %30 : vector<8x128xf32>
    %32 = math.exp %31 : vector<8x128xf32>
    %cst_16 = arith.constant 1.000000e+00 : f32
    %33 = vector.broadcast %cst_16 : f32 to vector<8x128xf32>
    %34 = arith.addf %33, %32 : vector<8x128xf32>
    %35 = arith.divf %33, %34 : vector<8x128xf32>
    %36 = vector.extract_strided_slice %35 {offsets = [0, 0], sizes = [8, 32], strides = [1, 1]} : vector<8x128xf32> to vector<8x32xf32>
    %37 = vector.extract_strided_slice %35 {offsets = [0, 32], sizes = [8, 32], strides = [1, 1]} : vector<8x128xf32> to vector<8x32xf32>
    %38 = vector.extract_strided_slice %35 {offsets = [0, 96], sizes = [8, 32], strides = [1, 1]} : vector<8x128xf32> to vector<8x32xf32>
    %39 = vector.extract_strided_slice %30 {offsets = [0, 64], sizes = [8, 32], strides = [1, 1]} : vector<8x128xf32> to vector<8x32xf32>
    %40 = math.tanh %39 : vector<8x32xf32>
    %41 = arith.mulf %37, %7 : vector<8x32xf32>
    %42 = arith.mulf %36, %40 : vector<8x32xf32>
    %43 = arith.addf %41, %42 : vector<8x32xf32>
    %44 = math.tanh %43 : vector<8x32xf32>
    %45 = arith.mulf %38, %44 : vector<8x32xf32>
    %c8 = arith.constant 8 : index
    %c0_17 = arith.constant 0 : index
    %46 = vector.load %arg0[%c8, %c0_17] : memref<64x128xf32, #tpu.memory_space<vmem>>, vector<8x128xf32>
    %cst_18 = arith.constant dense<0.000000e+00> : vector<8x128xf32>
    %47 = tpu.matmul %25, %0, %cst_18 {dimension_numbers = #tpu.dot_dimension_numbers<[1], [0], [0], [1], [0, 0, 1, 1], [], []>} : vector<8x32xf32>, vector<32x128xf32>, vector<8x128xf32> -> vector<8x128xf32>
    %48 = arith.addf %46, %47 : vector<8x128xf32>
    %49 = arith.negf %48 : vector<8x128xf32>
    %50 = math.exp %49 : vector<8x128xf32>
    %cst_19 = arith.constant 1.000000e+00 : f32
    %51 = vector.broadcast %cst_19 : f32 to vector<8x128xf32>
    %52 = arith.addf %51, %50 : vector<8x128xf32>
    %53 = arith.divf %51, %52 : vector<8x128xf32>
    %54 = vector.extract_strided_slice %53 {offsets = [0, 0], sizes = [8, 32], strides = [1, 1]} : vector<8x128xf32> to vector<8x32xf32>
    %55 = vector.extract_strided_slice %53 {offsets = [0, 32], sizes = [8, 32], strides = [1, 1]} : vector<8x128xf32> to vector<8x32xf32>
    %56 = vector.extract_strided_slice %53 {offsets = [0, 96], sizes = [8, 32], strides = [1, 1]} : vector<8x128xf32> to vector<8x32xf32>
    %57 = vector.extract_strided_slice %48 {offsets = [0, 64], sizes = [8, 32], strides = [1, 1]} : vector<8x128xf32> to vector<8x32xf32>
    %58 = math.tanh %57 : vector<8x32xf32>
    %59 = arith.mulf %55, %23 : vector<8x32xf32>
    %60 = arith.mulf %54, %58 : vector<8x32xf32>
    %61 = arith.addf %59, %60 : vector<8x32xf32>
    %62 = math.tanh %61 : vector<8x32xf32>
    %63 = arith.mulf %56, %62 : vector<8x32xf32>
    %cst_20 = arith.constant dense<0.000000e+00> : vector<8x128xf32>
    %64 = tpu.matmul %63, %2, %cst_20 {dimension_numbers = #tpu.dot_dimension_numbers<[1], [0], [0], [1], [0, 0, 1, 1], [], []>} : vector<8x32xf32>, vector<32x128xf32>, vector<8x128xf32> -> vector<8x128xf32>
    %65 = vector.broadcast %3 : vector<1x128xf32> to vector<8x128xf32>
    %66 = arith.addf %64, %65 : vector<8x128xf32>
    %cst_21 = arith.constant dense<0.000000e+00> : vector<8x128xf32>
    %67 = tpu.matmul %45, %1, %cst_21 {dimension_numbers = #tpu.dot_dimension_numbers<[1], [0], [0], [1], [0, 0, 1, 1], [], []>} : vector<8x32xf32>, vector<32x128xf32>, vector<8x128xf32> -> vector<8x128xf32>
    %68 = arith.addf %66, %67 : vector<8x128xf32>
    %69 = arith.negf %68 : vector<8x128xf32>
    %70 = math.exp %69 : vector<8x128xf32>
    %cst_22 = arith.constant 1.000000e+00 : f32
    %71 = vector.broadcast %cst_22 : f32 to vector<8x128xf32>
    %72 = arith.addf %71, %70 : vector<8x128xf32>
    %73 = arith.divf %71, %72 : vector<8x128xf32>
    %74 = vector.extract_strided_slice %73 {offsets = [0, 0], sizes = [8, 32], strides = [1, 1]} : vector<8x128xf32> to vector<8x32xf32>
    %75 = vector.extract_strided_slice %73 {offsets = [0, 32], sizes = [8, 32], strides = [1, 1]} : vector<8x128xf32> to vector<8x32xf32>
    %76 = vector.extract_strided_slice %73 {offsets = [0, 96], sizes = [8, 32], strides = [1, 1]} : vector<8x128xf32> to vector<8x32xf32>
    %77 = vector.extract_strided_slice %68 {offsets = [0, 64], sizes = [8, 32], strides = [1, 1]} : vector<8x128xf32> to vector<8x32xf32>
    %78 = math.tanh %77 : vector<8x32xf32>
    %79 = arith.mulf %75, %43 : vector<8x32xf32>
    %80 = arith.mulf %74, %78 : vector<8x32xf32>
    %81 = arith.addf %79, %80 : vector<8x32xf32>
    %82 = math.tanh %81 : vector<8x32xf32>
    %83 = arith.mulf %76, %82 : vector<8x32xf32>
    %c16 = arith.constant 16 : index
    %c0_23 = arith.constant 0 : index
    %84 = vector.load %arg0[%c16, %c0_23] : memref<64x128xf32, #tpu.memory_space<vmem>>, vector<8x128xf32>
    %cst_24 = arith.constant dense<0.000000e+00> : vector<8x128xf32>
    %85 = tpu.matmul %63, %0, %cst_24 {dimension_numbers = #tpu.dot_dimension_numbers<[1], [0], [0], [1], [0, 0, 1, 1], [], []>} : vector<8x32xf32>, vector<32x128xf32>, vector<8x128xf32> -> vector<8x128xf32>
    %86 = arith.addf %84, %85 : vector<8x128xf32>
    %87 = arith.negf %86 : vector<8x128xf32>
    %88 = math.exp %87 : vector<8x128xf32>
    %cst_25 = arith.constant 1.000000e+00 : f32
    %89 = vector.broadcast %cst_25 : f32 to vector<8x128xf32>
    %90 = arith.addf %89, %88 : vector<8x128xf32>
    %91 = arith.divf %89, %90 : vector<8x128xf32>
    %92 = vector.extract_strided_slice %91 {offsets = [0, 0], sizes = [8, 32], strides = [1, 1]} : vector<8x128xf32> to vector<8x32xf32>
    %93 = vector.extract_strided_slice %91 {offsets = [0, 32], sizes = [8, 32], strides = [1, 1]} : vector<8x128xf32> to vector<8x32xf32>
    %94 = vector.extract_strided_slice %91 {offsets = [0, 96], sizes = [8, 32], strides = [1, 1]} : vector<8x128xf32> to vector<8x32xf32>
    %95 = vector.extract_strided_slice %86 {offsets = [0, 64], sizes = [8, 32], strides = [1, 1]} : vector<8x128xf32> to vector<8x32xf32>
    %96 = math.tanh %95 : vector<8x32xf32>
    %97 = arith.mulf %93, %61 : vector<8x32xf32>
    %98 = arith.mulf %92, %96 : vector<8x32xf32>
    %99 = arith.addf %97, %98 : vector<8x32xf32>
    %100 = math.tanh %99 : vector<8x32xf32>
    %101 = arith.mulf %94, %100 : vector<8x32xf32>
    %cst_26 = arith.constant dense<0.000000e+00> : vector<8x128xf32>
    %102 = tpu.matmul %101, %2, %cst_26 {dimension_numbers = #tpu.dot_dimension_numbers<[1], [0], [0], [1], [0, 0, 1, 1], [], []>} : vector<8x32xf32>, vector<32x128xf32>, vector<8x128xf32> -> vector<8x128xf32>
    %103 = vector.broadcast %3 : vector<1x128xf32> to vector<8x128xf32>
    %104 = arith.addf %102, %103 : vector<8x128xf32>
    %cst_27 = arith.constant dense<0.000000e+00> : vector<8x128xf32>
    %105 = tpu.matmul %83, %1, %cst_27 {dimension_numbers = #tpu.dot_dimension_numbers<[1], [0], [0], [1], [0, 0, 1, 1], [], []>} : vector<8x32xf32>, vector<32x128xf32>, vector<8x128xf32> -> vector<8x128xf32>
    %106 = arith.addf %104, %105 : vector<8x128xf32>
    %107 = arith.negf %106 : vector<8x128xf32>
    %108 = math.exp %107 : vector<8x128xf32>
    %cst_28 = arith.constant 1.000000e+00 : f32
    %109 = vector.broadcast %cst_28 : f32 to vector<8x128xf32>
    %110 = arith.addf %109, %108 : vector<8x128xf32>
    %111 = arith.divf %109, %110 : vector<8x128xf32>
    %112 = vector.extract_strided_slice %111 {offsets = [0, 0], sizes = [8, 32], strides = [1, 1]} : vector<8x128xf32> to vector<8x32xf32>
    %113 = vector.extract_strided_slice %111 {offsets = [0, 32], sizes = [8, 32], strides = [1, 1]} : vector<8x128xf32> to vector<8x32xf32>
    %114 = vector.extract_strided_slice %111 {offsets = [0, 96], sizes = [8, 32], strides = [1, 1]} : vector<8x128xf32> to vector<8x32xf32>
    %115 = vector.extract_strided_slice %106 {offsets = [0, 64], sizes = [8, 32], strides = [1, 1]} : vector<8x128xf32> to vector<8x32xf32>
    %116 = math.tanh %115 : vector<8x32xf32>
    %117 = arith.mulf %113, %81 : vector<8x32xf32>
    %118 = arith.mulf %112, %116 : vector<8x32xf32>
    %119 = arith.addf %117, %118 : vector<8x32xf32>
    %120 = math.tanh %119 : vector<8x32xf32>
    %121 = arith.mulf %114, %120 : vector<8x32xf32>
    %c24 = arith.constant 24 : index
    %c0_29 = arith.constant 0 : index
    %122 = vector.load %arg0[%c24, %c0_29] : memref<64x128xf32, #tpu.memory_space<vmem>>, vector<8x128xf32>
    %cst_30 = arith.constant dense<0.000000e+00> : vector<8x128xf32>
    %123 = tpu.matmul %101, %0, %cst_30 {dimension_numbers = #tpu.dot_dimension_numbers<[1], [0], [0], [1], [0, 0, 1, 1], [], []>} : vector<8x32xf32>, vector<32x128xf32>, vector<8x128xf32> -> vector<8x128xf32>
    %124 = arith.addf %122, %123 : vector<8x128xf32>
    %125 = arith.negf %124 : vector<8x128xf32>
    %126 = math.exp %125 : vector<8x128xf32>
    %cst_31 = arith.constant 1.000000e+00 : f32
    %127 = vector.broadcast %cst_31 : f32 to vector<8x128xf32>
    %128 = arith.addf %127, %126 : vector<8x128xf32>
    %129 = arith.divf %127, %128 : vector<8x128xf32>
    %130 = vector.extract_strided_slice %129 {offsets = [0, 0], sizes = [8, 32], strides = [1, 1]} : vector<8x128xf32> to vector<8x32xf32>
    %131 = vector.extract_strided_slice %129 {offsets = [0, 32], sizes = [8, 32], strides = [1, 1]} : vector<8x128xf32> to vector<8x32xf32>
    %132 = vector.extract_strided_slice %129 {offsets = [0, 96], sizes = [8, 32], strides = [1, 1]} : vector<8x128xf32> to vector<8x32xf32>
    %133 = vector.extract_strided_slice %124 {offsets = [0, 64], sizes = [8, 32], strides = [1, 1]} : vector<8x128xf32> to vector<8x32xf32>
    %134 = math.tanh %133 : vector<8x32xf32>
    %135 = arith.mulf %131, %99 : vector<8x32xf32>
    %136 = arith.mulf %130, %134 : vector<8x32xf32>
    %137 = arith.addf %135, %136 : vector<8x32xf32>
    %138 = math.tanh %137 : vector<8x32xf32>
    %139 = arith.mulf %132, %138 : vector<8x32xf32>
    %cst_32 = arith.constant dense<0.000000e+00> : vector<8x128xf32>
    %140 = tpu.matmul %139, %2, %cst_32 {dimension_numbers = #tpu.dot_dimension_numbers<[1], [0], [0], [1], [0, 0, 1, 1], [], []>} : vector<8x32xf32>, vector<32x128xf32>, vector<8x128xf32> -> vector<8x128xf32>
    %141 = vector.broadcast %3 : vector<1x128xf32> to vector<8x128xf32>
    %142 = arith.addf %140, %141 : vector<8x128xf32>
    %cst_33 = arith.constant dense<0.000000e+00> : vector<8x128xf32>
    %143 = tpu.matmul %121, %1, %cst_33 {dimension_numbers = #tpu.dot_dimension_numbers<[1], [0], [0], [1], [0, 0, 1, 1], [], []>} : vector<8x32xf32>, vector<32x128xf32>, vector<8x128xf32> -> vector<8x128xf32>
    %144 = arith.addf %142, %143 : vector<8x128xf32>
    %145 = arith.negf %144 : vector<8x128xf32>
    %146 = math.exp %145 : vector<8x128xf32>
    %cst_34 = arith.constant 1.000000e+00 : f32
    %147 = vector.broadcast %cst_34 : f32 to vector<8x128xf32>
    %148 = arith.addf %147, %146 : vector<8x128xf32>
    %149 = arith.divf %147, %148 : vector<8x128xf32>
    %150 = vector.extract_strided_slice %149 {offsets = [0, 0], sizes = [8, 32], strides = [1, 1]} : vector<8x128xf32> to vector<8x32xf32>
    %151 = vector.extract_strided_slice %149 {offsets = [0, 32], sizes = [8, 32], strides = [1, 1]} : vector<8x128xf32> to vector<8x32xf32>
    %152 = vector.extract_strided_slice %149 {offsets = [0, 96], sizes = [8, 32], strides = [1, 1]} : vector<8x128xf32> to vector<8x32xf32>
    %153 = vector.extract_strided_slice %144 {offsets = [0, 64], sizes = [8, 32], strides = [1, 1]} : vector<8x128xf32> to vector<8x32xf32>
    %154 = math.tanh %153 : vector<8x32xf32>
    %155 = arith.mulf %151, %119 : vector<8x32xf32>
    %156 = arith.mulf %150, %154 : vector<8x32xf32>
    %157 = arith.addf %155, %156 : vector<8x32xf32>
    %158 = math.tanh %157 : vector<8x32xf32>
    %159 = arith.mulf %152, %158 : vector<8x32xf32>
    %c32 = arith.constant 32 : index
    %c0_35 = arith.constant 0 : index
    %160 = vector.load %arg0[%c32, %c0_35] : memref<64x128xf32, #tpu.memory_space<vmem>>, vector<8x128xf32>
    %cst_36 = arith.constant dense<0.000000e+00> : vector<8x128xf32>
    %161 = tpu.matmul %139, %0, %cst_36 {dimension_numbers = #tpu.dot_dimension_numbers<[1], [0], [0], [1], [0, 0, 1, 1], [], []>} : vector<8x32xf32>, vector<32x128xf32>, vector<8x128xf32> -> vector<8x128xf32>
    %162 = arith.addf %160, %161 : vector<8x128xf32>
    %163 = arith.negf %162 : vector<8x128xf32>
    %164 = math.exp %163 : vector<8x128xf32>
    %cst_37 = arith.constant 1.000000e+00 : f32
    %165 = vector.broadcast %cst_37 : f32 to vector<8x128xf32>
    %166 = arith.addf %165, %164 : vector<8x128xf32>
    %167 = arith.divf %165, %166 : vector<8x128xf32>
    %168 = vector.extract_strided_slice %167 {offsets = [0, 0], sizes = [8, 32], strides = [1, 1]} : vector<8x128xf32> to vector<8x32xf32>
    %169 = vector.extract_strided_slice %167 {offsets = [0, 32], sizes = [8, 32], strides = [1, 1]} : vector<8x128xf32> to vector<8x32xf32>
    %170 = vector.extract_strided_slice %167 {offsets = [0, 96], sizes = [8, 32], strides = [1, 1]} : vector<8x128xf32> to vector<8x32xf32>
    %171 = vector.extract_strided_slice %162 {offsets = [0, 64], sizes = [8, 32], strides = [1, 1]} : vector<8x128xf32> to vector<8x32xf32>
    %172 = math.tanh %171 : vector<8x32xf32>
    %173 = arith.mulf %169, %137 : vector<8x32xf32>
    %174 = arith.mulf %168, %172 : vector<8x32xf32>
    %175 = arith.addf %173, %174 : vector<8x32xf32>
    %176 = math.tanh %175 : vector<8x32xf32>
    %177 = arith.mulf %170, %176 : vector<8x32xf32>
    %cst_38 = arith.constant dense<0.000000e+00> : vector<8x128xf32>
    %178 = tpu.matmul %177, %2, %cst_38 {dimension_numbers = #tpu.dot_dimension_numbers<[1], [0], [0], [1], [0, 0, 1, 1], [], []>} : vector<8x32xf32>, vector<32x128xf32>, vector<8x128xf32> -> vector<8x128xf32>
    %179 = vector.broadcast %3 : vector<1x128xf32> to vector<8x128xf32>
    %180 = arith.addf %178, %179 : vector<8x128xf32>
    %cst_39 = arith.constant dense<0.000000e+00> : vector<8x128xf32>
    %181 = tpu.matmul %159, %1, %cst_39 {dimension_numbers = #tpu.dot_dimension_numbers<[1], [0], [0], [1], [0, 0, 1, 1], [], []>} : vector<8x32xf32>, vector<32x128xf32>, vector<8x128xf32> -> vector<8x128xf32>
    %182 = arith.addf %180, %181 : vector<8x128xf32>
    %183 = arith.negf %182 : vector<8x128xf32>
    %184 = math.exp %183 : vector<8x128xf32>
    %cst_40 = arith.constant 1.000000e+00 : f32
    %185 = vector.broadcast %cst_40 : f32 to vector<8x128xf32>
    %186 = arith.addf %185, %184 : vector<8x128xf32>
    %187 = arith.divf %185, %186 : vector<8x128xf32>
    %188 = vector.extract_strided_slice %187 {offsets = [0, 0], sizes = [8, 32], strides = [1, 1]} : vector<8x128xf32> to vector<8x32xf32>
    %189 = vector.extract_strided_slice %187 {offsets = [0, 32], sizes = [8, 32], strides = [1, 1]} : vector<8x128xf32> to vector<8x32xf32>
    %190 = vector.extract_strided_slice %187 {offsets = [0, 96], sizes = [8, 32], strides = [1, 1]} : vector<8x128xf32> to vector<8x32xf32>
    %191 = vector.extract_strided_slice %182 {offsets = [0, 64], sizes = [8, 32], strides = [1, 1]} : vector<8x128xf32> to vector<8x32xf32>
    %192 = math.tanh %191 : vector<8x32xf32>
    %193 = arith.mulf %189, %157 : vector<8x32xf32>
    %194 = arith.mulf %188, %192 : vector<8x32xf32>
    %195 = arith.addf %193, %194 : vector<8x32xf32>
    %196 = math.tanh %195 : vector<8x32xf32>
    %197 = arith.mulf %190, %196 : vector<8x32xf32>
    %c40 = arith.constant 40 : index
    %c0_41 = arith.constant 0 : index
    %198 = vector.load %arg0[%c40, %c0_41] : memref<64x128xf32, #tpu.memory_space<vmem>>, vector<8x128xf32>
    %cst_42 = arith.constant dense<0.000000e+00> : vector<8x128xf32>
    %199 = tpu.matmul %177, %0, %cst_42 {dimension_numbers = #tpu.dot_dimension_numbers<[1], [0], [0], [1], [0, 0, 1, 1], [], []>} : vector<8x32xf32>, vector<32x128xf32>, vector<8x128xf32> -> vector<8x128xf32>
    %200 = arith.addf %198, %199 : vector<8x128xf32>
    %201 = arith.negf %200 : vector<8x128xf32>
    %202 = math.exp %201 : vector<8x128xf32>
    %cst_43 = arith.constant 1.000000e+00 : f32
    %203 = vector.broadcast %cst_43 : f32 to vector<8x128xf32>
    %204 = arith.addf %203, %202 : vector<8x128xf32>
    %205 = arith.divf %203, %204 : vector<8x128xf32>
    %206 = vector.extract_strided_slice %205 {offsets = [0, 0], sizes = [8, 32], strides = [1, 1]} : vector<8x128xf32> to vector<8x32xf32>
    %207 = vector.extract_strided_slice %205 {offsets = [0, 32], sizes = [8, 32], strides = [1, 1]} : vector<8x128xf32> to vector<8x32xf32>
    %208 = vector.extract_strided_slice %205 {offsets = [0, 96], sizes = [8, 32], strides = [1, 1]} : vector<8x128xf32> to vector<8x32xf32>
    %209 = vector.extract_strided_slice %200 {offsets = [0, 64], sizes = [8, 32], strides = [1, 1]} : vector<8x128xf32> to vector<8x32xf32>
    %210 = math.tanh %209 : vector<8x32xf32>
    %211 = arith.mulf %207, %175 : vector<8x32xf32>
    %212 = arith.mulf %206, %210 : vector<8x32xf32>
    %213 = arith.addf %211, %212 : vector<8x32xf32>
    %214 = math.tanh %213 : vector<8x32xf32>
    %215 = arith.mulf %208, %214 : vector<8x32xf32>
    %cst_44 = arith.constant dense<0.000000e+00> : vector<8x128xf32>
    %216 = tpu.matmul %215, %2, %cst_44 {dimension_numbers = #tpu.dot_dimension_numbers<[1], [0], [0], [1], [0, 0, 1, 1], [], []>} : vector<8x32xf32>, vector<32x128xf32>, vector<8x128xf32> -> vector<8x128xf32>
    %217 = vector.broadcast %3 : vector<1x128xf32> to vector<8x128xf32>
    %218 = arith.addf %216, %217 : vector<8x128xf32>
    %cst_45 = arith.constant dense<0.000000e+00> : vector<8x128xf32>
    %219 = tpu.matmul %197, %1, %cst_45 {dimension_numbers = #tpu.dot_dimension_numbers<[1], [0], [0], [1], [0, 0, 1, 1], [], []>} : vector<8x32xf32>, vector<32x128xf32>, vector<8x128xf32> -> vector<8x128xf32>
    %220 = arith.addf %218, %219 : vector<8x128xf32>
    %221 = arith.negf %220 : vector<8x128xf32>
    %222 = math.exp %221 : vector<8x128xf32>
    %cst_46 = arith.constant 1.000000e+00 : f32
    %223 = vector.broadcast %cst_46 : f32 to vector<8x128xf32>
    %224 = arith.addf %223, %222 : vector<8x128xf32>
    %225 = arith.divf %223, %224 : vector<8x128xf32>
    %226 = vector.extract_strided_slice %225 {offsets = [0, 0], sizes = [8, 32], strides = [1, 1]} : vector<8x128xf32> to vector<8x32xf32>
    %227 = vector.extract_strided_slice %225 {offsets = [0, 32], sizes = [8, 32], strides = [1, 1]} : vector<8x128xf32> to vector<8x32xf32>
    %228 = vector.extract_strided_slice %225 {offsets = [0, 96], sizes = [8, 32], strides = [1, 1]} : vector<8x128xf32> to vector<8x32xf32>
    %229 = vector.extract_strided_slice %220 {offsets = [0, 64], sizes = [8, 32], strides = [1, 1]} : vector<8x128xf32> to vector<8x32xf32>
    %230 = math.tanh %229 : vector<8x32xf32>
    %231 = arith.mulf %227, %195 : vector<8x32xf32>
    %232 = arith.mulf %226, %230 : vector<8x32xf32>
    %233 = arith.addf %231, %232 : vector<8x32xf32>
    %234 = math.tanh %233 : vector<8x32xf32>
    %235 = arith.mulf %228, %234 : vector<8x32xf32>
    %c48 = arith.constant 48 : index
    %c0_47 = arith.constant 0 : index
    %236 = vector.load %arg0[%c48, %c0_47] : memref<64x128xf32, #tpu.memory_space<vmem>>, vector<8x128xf32>
    %cst_48 = arith.constant dense<0.000000e+00> : vector<8x128xf32>
    %237 = tpu.matmul %215, %0, %cst_48 {dimension_numbers = #tpu.dot_dimension_numbers<[1], [0], [0], [1], [0, 0, 1, 1], [], []>} : vector<8x32xf32>, vector<32x128xf32>, vector<8x128xf32> -> vector<8x128xf32>
    %238 = arith.addf %236, %237 : vector<8x128xf32>
    %239 = arith.negf %238 : vector<8x128xf32>
    %240 = math.exp %239 : vector<8x128xf32>
    %cst_49 = arith.constant 1.000000e+00 : f32
    %241 = vector.broadcast %cst_49 : f32 to vector<8x128xf32>
    %242 = arith.addf %241, %240 : vector<8x128xf32>
    %243 = arith.divf %241, %242 : vector<8x128xf32>
    %244 = vector.extract_strided_slice %243 {offsets = [0, 0], sizes = [8, 32], strides = [1, 1]} : vector<8x128xf32> to vector<8x32xf32>
    %245 = vector.extract_strided_slice %243 {offsets = [0, 32], sizes = [8, 32], strides = [1, 1]} : vector<8x128xf32> to vector<8x32xf32>
    %246 = vector.extract_strided_slice %243 {offsets = [0, 96], sizes = [8, 32], strides = [1, 1]} : vector<8x128xf32> to vector<8x32xf32>
    %247 = vector.extract_strided_slice %238 {offsets = [0, 64], sizes = [8, 32], strides = [1, 1]} : vector<8x128xf32> to vector<8x32xf32>
    %248 = math.tanh %247 : vector<8x32xf32>
    %249 = arith.mulf %245, %213 : vector<8x32xf32>
    %250 = arith.mulf %244, %248 : vector<8x32xf32>
    %251 = arith.addf %249, %250 : vector<8x32xf32>
    %252 = math.tanh %251 : vector<8x32xf32>
    %253 = arith.mulf %246, %252 : vector<8x32xf32>
    %cst_50 = arith.constant dense<0.000000e+00> : vector<8x128xf32>
    %254 = tpu.matmul %253, %2, %cst_50 {dimension_numbers = #tpu.dot_dimension_numbers<[1], [0], [0], [1], [0, 0, 1, 1], [], []>} : vector<8x32xf32>, vector<32x128xf32>, vector<8x128xf32> -> vector<8x128xf32>
    %255 = vector.broadcast %3 : vector<1x128xf32> to vector<8x128xf32>
    %256 = arith.addf %254, %255 : vector<8x128xf32>
    %cst_51 = arith.constant dense<0.000000e+00> : vector<8x128xf32>
    %257 = tpu.matmul %235, %1, %cst_51 {dimension_numbers = #tpu.dot_dimension_numbers<[1], [0], [0], [1], [0, 0, 1, 1], [], []>} : vector<8x32xf32>, vector<32x128xf32>, vector<8x128xf32> -> vector<8x128xf32>
    %258 = arith.addf %256, %257 : vector<8x128xf32>
    %259 = arith.negf %258 : vector<8x128xf32>
    %260 = math.exp %259 : vector<8x128xf32>
    %cst_52 = arith.constant 1.000000e+00 : f32
    %261 = vector.broadcast %cst_52 : f32 to vector<8x128xf32>
    %262 = arith.addf %261, %260 : vector<8x128xf32>
    %263 = arith.divf %261, %262 : vector<8x128xf32>
    %264 = vector.extract_strided_slice %263 {offsets = [0, 0], sizes = [8, 32], strides = [1, 1]} : vector<8x128xf32> to vector<8x32xf32>
    %265 = vector.extract_strided_slice %263 {offsets = [0, 32], sizes = [8, 32], strides = [1, 1]} : vector<8x128xf32> to vector<8x32xf32>
    %266 = vector.extract_strided_slice %263 {offsets = [0, 96], sizes = [8, 32], strides = [1, 1]} : vector<8x128xf32> to vector<8x32xf32>
    %267 = vector.extract_strided_slice %258 {offsets = [0, 64], sizes = [8, 32], strides = [1, 1]} : vector<8x128xf32> to vector<8x32xf32>
    %268 = math.tanh %267 : vector<8x32xf32>
    %269 = arith.mulf %265, %233 : vector<8x32xf32>
    %270 = arith.mulf %264, %268 : vector<8x32xf32>
    %271 = arith.addf %269, %270 : vector<8x32xf32>
    %272 = math.tanh %271 : vector<8x32xf32>
    %273 = arith.mulf %266, %272 : vector<8x32xf32>
    %c56 = arith.constant 56 : index
    %c0_53 = arith.constant 0 : index
    %274 = vector.load %arg0[%c56, %c0_53] : memref<64x128xf32, #tpu.memory_space<vmem>>, vector<8x128xf32>
    %cst_54 = arith.constant dense<0.000000e+00> : vector<8x128xf32>
    %275 = tpu.matmul %253, %0, %cst_54 {dimension_numbers = #tpu.dot_dimension_numbers<[1], [0], [0], [1], [0, 0, 1, 1], [], []>} : vector<8x32xf32>, vector<32x128xf32>, vector<8x128xf32> -> vector<8x128xf32>
    %276 = arith.addf %274, %275 : vector<8x128xf32>
    %277 = arith.negf %276 : vector<8x128xf32>
    %278 = math.exp %277 : vector<8x128xf32>
    %cst_55 = arith.constant 1.000000e+00 : f32
    %279 = vector.broadcast %cst_55 : f32 to vector<8x128xf32>
    %280 = arith.addf %279, %278 : vector<8x128xf32>
    %281 = arith.divf %279, %280 : vector<8x128xf32>
    %282 = vector.extract_strided_slice %281 {offsets = [0, 0], sizes = [8, 32], strides = [1, 1]} : vector<8x128xf32> to vector<8x32xf32>
    %283 = vector.extract_strided_slice %281 {offsets = [0, 32], sizes = [8, 32], strides = [1, 1]} : vector<8x128xf32> to vector<8x32xf32>
    %284 = vector.extract_strided_slice %281 {offsets = [0, 96], sizes = [8, 32], strides = [1, 1]} : vector<8x128xf32> to vector<8x32xf32>
    %285 = vector.extract_strided_slice %276 {offsets = [0, 64], sizes = [8, 32], strides = [1, 1]} : vector<8x128xf32> to vector<8x32xf32>
    %286 = math.tanh %285 : vector<8x32xf32>
    %287 = arith.mulf %283, %251 : vector<8x32xf32>
    %288 = arith.mulf %282, %286 : vector<8x32xf32>
    %289 = arith.addf %287, %288 : vector<8x32xf32>
    %290 = math.tanh %289 : vector<8x32xf32>
    %291 = arith.mulf %284, %290 : vector<8x32xf32>
    %cst_56 = arith.constant dense<0.000000e+00> : vector<8x128xf32>
    %292 = tpu.matmul %291, %2, %cst_56 {dimension_numbers = #tpu.dot_dimension_numbers<[1], [0], [0], [1], [0, 0, 1, 1], [], []>} : vector<8x32xf32>, vector<32x128xf32>, vector<8x128xf32> -> vector<8x128xf32>
    %293 = vector.broadcast %3 : vector<1x128xf32> to vector<8x128xf32>
    %294 = arith.addf %292, %293 : vector<8x128xf32>
    %cst_57 = arith.constant dense<0.000000e+00> : vector<8x128xf32>
    %295 = tpu.matmul %273, %1, %cst_57 {dimension_numbers = #tpu.dot_dimension_numbers<[1], [0], [0], [1], [0, 0, 1, 1], [], []>} : vector<8x32xf32>, vector<32x128xf32>, vector<8x128xf32> -> vector<8x128xf32>
    %296 = arith.addf %294, %295 : vector<8x128xf32>
    %297 = arith.negf %296 : vector<8x128xf32>
    %298 = math.exp %297 : vector<8x128xf32>
    %cst_58 = arith.constant 1.000000e+00 : f32
    %299 = vector.broadcast %cst_58 : f32 to vector<8x128xf32>
    %300 = arith.addf %299, %298 : vector<8x128xf32>
    %301 = arith.divf %299, %300 : vector<8x128xf32>
    %302 = vector.extract_strided_slice %301 {offsets = [0, 0], sizes = [8, 32], strides = [1, 1]} : vector<8x128xf32> to vector<8x32xf32>
    %303 = vector.extract_strided_slice %301 {offsets = [0, 32], sizes = [8, 32], strides = [1, 1]} : vector<8x128xf32> to vector<8x32xf32>
    %304 = vector.extract_strided_slice %301 {offsets = [0, 96], sizes = [8, 32], strides = [1, 1]} : vector<8x128xf32> to vector<8x32xf32>
    %305 = vector.extract_strided_slice %296 {offsets = [0, 64], sizes = [8, 32], strides = [1, 1]} : vector<8x128xf32> to vector<8x32xf32>
    %306 = math.tanh %305 : vector<8x32xf32>
    %307 = arith.mulf %303, %271 : vector<8x32xf32>
    %308 = arith.mulf %302, %306 : vector<8x32xf32>
    %309 = arith.addf %307, %308 : vector<8x32xf32>
    %310 = math.tanh %309 : vector<8x32xf32>
    %311 = arith.mulf %304, %310 : vector<8x32xf32>
    %c0_59 = arith.constant 0 : index
    %c0_60 = arith.constant 0 : index
    %312 = vector.load %arg5[%c0_59, %c0_60] : memref<32x128xf32, #tpu.memory_space<vmem>>, vector<32x128xf32>
    %cst_61 = arith.constant dense<0.000000e+00> : vector<8x128xf32>
    %313 = tpu.matmul %311, %312, %cst_61 {dimension_numbers = #tpu.dot_dimension_numbers<[1], [0], [0], [1], [0, 0, 1, 1], [], []>} : vector<8x32xf32>, vector<32x128xf32>, vector<8x128xf32> -> vector<8x128xf32>
    %c0_62 = arith.constant 0 : index
    %c0_63 = arith.constant 0 : index
    %314 = vector.load %arg6[%c0_62, %c0_63] : memref<1x128xf32, #tpu.memory_space<vmem>>, vector<1x128xf32>
    %315 = vector.broadcast %314 : vector<1x128xf32> to vector<8x128xf32>
    %316 = arith.addf %313, %315 : vector<8x128xf32>
    %c0_64 = arith.constant 0 : index
    %c0_65 = arith.constant 0 : index
    %317 = vector.load %arg7[%c0_64, %c0_65] : memref<8x128xf32, #tpu.memory_space<vmem>>, vector<8x128xf32>
    tpu.vector_store %arg7[%c0_64, %c0_65], %316 {strides = array<i32>} : memref<8x128xf32, #tpu.memory_space<vmem>>, vector<8x128xf32>,
    return
  }
}

</mosaic_0001>

<bundles_post_ra>
// kernel: lstm_forward.1
= control target key start
LH: loop header
LB: loop body
LE: loop exit
PB: predicated region body
PF: predicated region fallthrough
CT: control target
= control target key end

     0   :  { %v1428_v4 = vmov 0.0   ;;  %s1430_s11 = smov 32   ;;  %vm40_vm4 = vcmask 261120   ;;  %s1826_s3 = inlined_call_operand.vmem [shape: f32[32,128], index: 3, kind: input, shape index: {}]   ;;  %s1827_s0 = inlined_call_operand.vmem [shape: f32[64,128], index: 0, kind: input, shape index: {}]   ;;  %s1828_s4 = inlined_call_operand.vmem [shape: f32[32,128], index: 4, kind: input, shape index: {}]   ;;  %s1829_s1 = inlined_call_operand.vmem [shape: f32[32,128], index: 1, kind: input, shape index: {}]   ;;  %s1830_s2 = inlined_call_operand.vmem [shape: f32[1,128], index: 2, kind: input, shape index: {}]   ;;  %s1831_s5 = inlined_call_operand.vmem [shape: f32[32,128], index: 5, kind: input, shape index: {}]   ;;  %s1832_s6 = inlined_call_operand.vmem [shape: f32[1,128], index: 6, kind: input, shape index: {}]   ;;  %s1833_s7 = inlined_call_operand.vmem [shape: f32[8,128], index: 7, kind: output, shape index: {}]  }
   0x1   :  { %v1474_v0 = vld [vmem:[%s1826_s3 + $0x18] sm:$0xff]  ;;  %v1479_v1 = vld [vmem:[%s1826_s3 + $0x10] sm:$0xff]  ;;  %v1486_v2 = vld [vmem:[%s1826_s3 + $0x8] sm:$0xff] }
   0x2   :  { %56 = vmatpush.msra.mxu0 %v1474_v0  ;;  %201 = vmatpush.msra.mxu3 %v1474_v0  ;;  %v1493_v3 = vld [vmem:[%s1826_s3] sm:$0xff]  ;;  %s1429_s3 = smov 64   ;;  %v1511_v28 = vld [vmem:[%s1828_s4 + $0x18] sm:$0xff]  ;;  %v1516_v29 = vld [vmem:[%s1828_s4 + $0x10] sm:$0xff] }
   0x3   :  { %v39_v5 = vld [vmem:[%s1827_s0] sm:$0xff]  ;;  %v1521_v30 = vld [vmem:[%s1829_s1 + $0x18] sm:$0xff]  ;;  %142 = vmatpush.msra.mxu2 %v1511_v28  ;;  %v1528_v31 = vld [vmem:[%s1829_s1 + $0x10] sm:$0xff] }
   0x4   :  { %57 = vmatpush.msra.mxu0 %v1479_v1  ;;  %202 = vmatpush.msra.mxu3 %v1479_v1  ;;  %v1533_v32 = vld [vmem:[%s1828_s4 + $0x8] sm:$0xff]  ;;  %v1547_v34 = vld [vmem:[%s1828_s4] sm:$0xff] }
   0x5   :  { %122 = vmatpush.msra.mxu1 %v1521_v30  ;;  %v1538_v33 = vld [vmem:[%s1829_s1 + $0x8] sm:$0xff]  ;;  %143 = vmatpush.msra.mxu2 %v1516_v29  ;;  %v1552_v35 = vld [vmem:[%s1829_s1] sm:$0xff] }
   0x6   :  { %58 = vmatpush.msra.mxu0 %v1486_v2  ;;  %203 = vmatpush.msra.mxu3 %v1486_v2  ;;  %v188_v39 = vld [vmem:[%s1827_s0 + $0x8] sm:$0xff]  ;;  %v1597_v40 = vld [vmem:[%s1830_s2] ss:$0 sm:$0xff] }
   0x7   :  { %123 = vmatpush.msra.mxu1 %v1528_v31  ;;  %144 = vmatpush.msra.mxu2 %v1533_v32 }
   0x8   :  { %59 = vmatpush.msra.mxu0 %v1493_v3  ;;  %204 = vmatpush.msra.mxu3 %v1493_v3 }
   0x9   :  { %60 = vmatmul.f32.vlgmr.msra.gmra.mxu0 %v1428_v4  ;;  %124 = vmatpush.msra.mxu1 %v1538_v33 }
   0xa   :  { %264 = vmatpush.msrb.mxu0 %v1521_v30  ;;  %411 = vmatpush.msrb.mxu3 %v1521_v30 }
   0xb   :  { %145 = vmatpush.msra.mxu2 %v1547_v34  ;;  %125 = vmatpush.msra.mxu1 %v1552_v35 }
   0xc   :  { %265 = vmatpush.msrb.mxu0 %v1528_v31  ;;  %412 = vmatpush.msrb.mxu3 %v1528_v31 }
   0xd   :  { %146 = vmatmul.f32.vlgmr.msra.gmra.mxu2 %v1428_v4  ;;  %289 = vmatpush.msrb.mxu1 %v1511_v28 }
   0xe   :  { %266 = vmatpush.msrb.mxu0 %v1538_v33  ;;  %413 = vmatpush.msrb.mxu3 %v1538_v33 }
   0xf   :  { %348 = vmatpush.msrb.mxu2 %v1474_v0  ;;  %290 = vmatpush.msrb.mxu1 %v1516_v29 }
  0x10   :  { %267 = vmatpush.msrb.mxu0 %v1552_v35  ;;  %414 = vmatpush.msrb.mxu3 %v1552_v35 }
  0x11   :  { %349 = vmatpush.msrb.mxu2 %v1479_v1  ;;  %291 = vmatpush.msrb.mxu1 %v1533_v32 }
  0x12   :  { %436 = vmatpush.msra.mxu0 %v1511_v28 }
  0x13   :  { %350 = vmatpush.msrb.mxu2 %v1486_v2  ;;  %292 = vmatpush.msrb.mxu1 %v1547_v34 }
  0x14   :  { %437 = vmatpush.msra.mxu0 %v1516_v29 }
  0x15   :  { %351 = vmatpush.msrb.mxu2 %v1493_v3 }
  0x16   :  { %438 = vmatpush.msra.mxu0 %v1533_v32 }
  0x17   :  { %558 = vmatpush.msra.mxu2 %v1521_v30 }
  0x18   :  { %439 = vmatpush.msra.mxu0 %v1547_v34 }
  0x19   :  { %559 = vmatpush.msra.mxu2 %v1528_v31 }
  0x1b   :  { %560 = vmatpush.msra.mxu2 %v1538_v33 }
  0x1d   :  { %561 = vmatpush.msra.mxu2 %v1552_v35 }
  0x86   :  { %v61_v6 = vpop.f32.mrf.mxu0 }
  0x87   :  { %v64_v7 = vadd.f32 %v61_v6, %v39_v5 }
  0x89   :  { %1299 = vtanh.f32 %v64_v7  ;;  %v1255_v9 = vmul.f32 -1.442695, %v64_v7 }
  0x8b   :  { %1301 = vpow2.f32 %v1255_v9 }
  0x8f   :  { %v1300_v8 = vpop.eup %1299 }
  0x90   :  { %87 = vrot.lane.b32.xlu0 %v1300_v8, %s1429_s3  ;;  %v147_v45 = vpop.f32.mrf.mxu2 }
  0x91   :  { %v1302_v10 = vpop.eup %1301 }
  0x92   :  { %v68_v11 = vadd.f32 1.0, %v1302_v10 }
  0x94   :  { %1303 = vrcp.f32 %v68_v11  ;;  %v80_v17 = vand.u32 2147483648, %v68_v11  ;;  %vm74_vm1 = vweird.f32 %v68_v11  ;;  %v78_v18 = vand.u32 2147483647, %v68_v11 }
  0x96   :  { %v81_v20 = vor.u32 1.1754944e-38, %v80_v17  ;;  %vm79_vm3 = vcmp.eq.f32.partialorder %v78_v18, 8.507059e+37 }
  0x9a   :  { %v1304_v12 = vpop.eup %1303 }
  0x9b   :  { %v70_v13 = vmul.f32 %v1304_v12, %v68_v11  ;;  %vm75_vm0 = vweird.f32 %v1304_v12 }
  0x9c   :  { %vm76_vm2 = vmor %vm74_vm1, %vm75_vm0 }
  0x9d   :  { %v71_v14 = vsub.f32 1.0, %v70_v13 }
  0x9f   :  { %v72_v15 = vmul.f32 %v1304_v12, %v71_v14 }
  0xa1   :  { %v73_v16 = vadd.f32 %v1304_v12, %v72_v15 }
  0xa3   :  { %v77_v19 = vsel %vm76_vm2, %v1304_v12, %v73_v16 }
  0xa4   :  { %v82_v22 = vsel %vm79_vm3, %v81_v20, %v77_v19 }
  0xa5   :  { %v85_v24 = vmul.f32 0.0, %v82_v22 }
 0x102   :  { %v88_v21 = vpop.permute.xlu0 %87 }
 0x103   :  { %v90_v23 = vmul.f32 %v88_v21, %v82_v22 }
 0x105   :  { %92 = vrot.lane.b32.xlu0 %v90_v23, %s1430_s11 }
 0x177   :  { %v93_v25 = vpop.permute.xlu0 %92 }
 0x178   :  { %v1504_v26 = vadd.f32 %v93_v25, %v85_v24 }
 0x17a   :  { %1305 = vtanh.f32 %v1504_v26 }
 0x180   :  { %v1306_v27 = vpop.eup %1305 }
 0x181   :  { %98 = vrot.lane.b32.xlu1 %v1306_v27, %s1429_s3 }
 0x1f3   :  { %v99_v36 = vpop.permute.xlu1 %98 }
 0x1f4   :  { %v101_v37 = vmul.f32 %v99_v36, %v82_v22 }
 0x1f6   :  { %106 = vrot.lane.b32.xlu1 %v101_v37, %s1430_s11 }
 0x268   :  { %v107_v38 = vpop.permute.xlu1 %106 }
 0x269   :  { %1256 = vmatmul.msk.f32.vlgmr.msra.gmra.mxu1 %vm40_vm4, %v107_v38  ;;  %1258 = vmatmul.msk.f32.vlgmr.msra.gmra.mxu3 %vm40_vm4, %v107_v38 }
 0x26a   :  { %495 = vmatpush.msra.mxu1 %v1474_v0  ;;  %583 = vmatpush.msra.mxu3 %v1511_v28 }
 0x26c   :  { %496 = vmatpush.msra.mxu1 %v1479_v1  ;;  %584 = vmatpush.msra.mxu3 %v1516_v29 }
 0x26e   :  { %497 = vmatpush.msra.mxu1 %v1486_v2  ;;  %585 = vmatpush.msra.mxu3 %v1533_v32 }
 0x270   :  { %498 = vmatpush.msra.mxu1 %v1493_v3  ;;  %586 = vmatpush.msra.mxu3 %v1547_v34 }
 0x2e6   :  { %v127_v41 = vpop.f32.mrf.mxu1 }
 0x2e7   :  { %v128_v44 = vadd.f32 %v1597_v40, %v127_v41 }
 0x2e9   :  { %v150_v46 = vadd.f32 %v147_v45, %v128_v44 }
 0x2eb   :  { %v1257_v50 = vmul.f32 -1.442695, %v150_v46 }
 0x2ec   :  { %v206_v42 = vpop.f32.mrf.mxu3 }
 0x2ed   :  { %v209_v43 = vadd.f32 %v206_v42, %v188_v39 }
 0x2ef   :  { %1307 = vtanh.f32 %v209_v43  ;;  %v1259_v49 = vmul.f32 -1.442695, %v209_v43  ;;  %v335_v43 = vld [vmem:[%s1827_s0 + $0x10] sm:$0xff] }
 0x2f0   :  { %1309 = vtanh.f32 %v150_v46 }
 0x2f1   :  { %1311 = vpow2.f32 %v1259_v49 }
 0x2f2   :  { %1313 = vpow2.f32 %v1257_v50 }
 0x2f5   :  { %v1308_v47 = vpop.eup %1307 }
 0x2f6   :  { %232 = vrot.lane.b32.xlu2 %v1308_v47, %s1429_s3  ;;  %v1310_v48 = vpop.eup %1309 }
 0x2f7   :  { %v1312_v51 = vpop.eup %1311 }
 0x2f8   :  { %v213_v52 = vadd.f32 1.0, %v1312_v51  ;;  %v1314_v53 = vpop.eup %1313 }
 0x2f9   :  { %v154_v54 = vadd.f32 1.0, %v1314_v53 }
 0x2fa   :  { %1315 = vrcp.f32 %v213_v52  ;;  %v225_v63 = vand.u32 2147483648, %v213_v52  ;;  %vm219_vm6 = vweird.f32 %v213_v52  ;;  %v223_v4 = vand.u32 2147483647, %v213_v52 }
 0x2fb   :  { %1317 = vrcp.f32 %v154_v54  ;;  %v166_v12 = vand.u32 2147483648, %v154_v54  ;;  %vm160_vm10 = vweird.f32 %v154_v54  ;;  %v164_v13 = vand.u32 2147483647, %v154_v54 }
 0x2fc   :  { %v226_v7 = vor.u32 1.1754944e-38, %v225_v63  ;;  %vm224_vm8 = vcmp.eq.f32.partialorder %v223_v4, 8.507059e+37 }
 0x2fd   :  { %v167_v15 = vor.u32 1.1754944e-38, %v166_v12  ;;  %vm165_vm12 = vcmp.eq.f32.partialorder %v164_v13, 8.507059e+37 }
 0x2fe   :  { %173 = vrot.lane.b32.xlu2 %v1310_v48, %s1429_s3 }
 0x300   :  { %v1316_v55 = vpop.eup %1315 }
 0x301   :  { %v215_v56 = vmul.f32 %v1316_v55, %v213_v52  ;;  %v1318_v58 = vpop.eup %1317  ;;  %vm220_vm5 = vweird.f32 %v1316_v55 }
 0x302   :  { %v156_v60 = vmul.f32 %v1318_v58, %v154_v54  ;;  %vm221_vm7 = vmor %vm219_vm6, %vm220_vm5  ;;  %vm161_vm9 = vweird.f32 %v1318_v58 }
 0x303   :  { %v216_v57 = vsub.f32 1.0, %v215_v56  ;;  %vm162_vm11 = vmor %vm160_vm10, %vm161_vm9 }
 0x304   :  { %v157_v62 = vsub.f32 1.0, %v156_v60 }
 0x305   :  { %v217_v59 = vmul.f32 %v1316_v55, %v216_v57 }
 0x306   :  { %v158_v6 = vmul.f32 %v1318_v58, %v157_v62 }
 0x307   :  { %v218_v61 = vadd.f32 %v1316_v55, %v217_v59 }
 0x308   :  { %v159_v11 = vadd.f32 %v1318_v58, %v158_v6 }
 0x309   :  { %v222_v5 = vsel %vm221_vm7, %v1316_v55, %v218_v61 }
 0x30a   :  { %v227_v9 = vsel %vm224_vm8, %v226_v7, %v222_v5  ;;  %v163_v14 = vsel %vm162_vm11, %v1318_v58, %v159_v11 }
 0x30b   :  { %v168_v17 = vsel %vm165_vm12, %v167_v15, %v163_v14  ;;  %v230_v19 = vmul.f32 %v227_v9, %v1504_v26 }
 0x30c   :  { %v171_v22 = vmul.f32 0.0, %v168_v17 }
 0x350   :  { %v233_v8 = vpop.permute.xlu2 %232 }
 0x351   :  { %v235_v10 = vmul.f32 %v233_v8, %v227_v9 }
 0x353   :  { %237 = vrot.lane.b32.xlu0 %v235_v10, %s1430_s11 }
 0x358   :  { %v174_v16 = vpop.permute.xlu2 %173 }
 0x359   :  { %v176_v18 = vmul.f32 %v174_v16, %v168_v17 }
 0x35b   :  { %178 = vrot.lane.b32.xlu1 %v176_v18, %s1430_s11 }
 0x3c5   :  { %v238_v20 = vpop.permute.xlu0 %237 }
 0x3c6   :  { %v1605_v21 = vadd.f32 %v238_v20, %v230_v19 }
 0x3c8   :  { %1319 = vtanh.f32 %v1605_v21 }
 0x3cd   :  { %v179_v23 = vpop.permute.xlu1 %178 }
 0x3ce   :  { %v1320_v24 = vpop.eup %1319  ;;  %v1608_v25 = vadd.f32 %v179_v23, %v171_v22 }
 0x3cf   :  { %243 = vrot.lane.b32.xlu2 %v1320_v24, %s1429_s3 }
 0x3d0   :  { %1321 = vtanh.f32 %v1608_v25 }
 0x3d6   :  { %v1322_v27 = vpop.eup %1321 }
 0x3d7   :  { %184 = vrot.lane.b32.xlu0 %v1322_v27, %s1429_s3 }
 0x429   :  { %v244_v36 = vpop.permute.xlu2 %243 }
 0x42a   :  { %v246_v37 = vmul.f32 %v244_v36, %v227_v9 }
 0x42c   :  { %248 = vrot.lane.b32.xlu1 %v246_v37, %s1430_s11 }
 0x449   :  { %v185_v26 = vpop.permute.xlu0 %184 }
 0x44a   :  { %v187_v38 = vmul.f32 %v185_v26, %v168_v17 }
 0x44c   :  { %273 = vrot.lane.b32.xlu2 %v187_v38, %s1430_s11 }
 0x49e   :  { %v249_v39 = vpop.permute.xlu1 %248 }
 0x49f   :  { %1260 = vmatmul.msk.f32.vlgmr.msrb.gmra.mxu0 %vm40_vm4, %v249_v39  ;;  %1263 = vmatmul.msk.f32.vlgmr.msrb.gmra.mxu2 %vm40_vm4, %v249_v39 }
 0x4a0   :  { %642 = vmatpush.msrb.mxu0 %v1474_v0  ;;  %730 = vmatpush.msrb.mxu2 %v1511_v28 }
 0x4a2   :  { %643 = vmatpush.msrb.mxu0 %v1479_v1  ;;  %731 = vmatpush.msrb.mxu2 %v1516_v29 }
 0x4a4   :  { %644 = vmatpush.msrb.mxu0 %v1486_v2  ;;  %732 = vmatpush.msrb.mxu2 %v1533_v32 }
 0x4a6   :  { %v274_v41 = vpop.permute.xlu2 %273  ;;  %645 = vmatpush.msrb.mxu0 %v1493_v3  ;;  %733 = vmatpush.msrb.mxu2 %v1547_v34 }
 0x4a7   :  { %1261 = vmatmul.msk.f32.vlgmr.msrb.gmra.mxu1 %vm40_vm4, %v274_v41 }
 0x4a8   :  { %705 = vmatpush.msrb.mxu1 %v1521_v30 }
 0x4aa   :  { %706 = vmatpush.msrb.mxu1 %v1528_v31 }
 0x4ac   :  { %707 = vmatpush.msrb.mxu1 %v1538_v33 }
 0x4ae   :  { %708 = vmatpush.msrb.mxu1 %v1552_v35 }
 0x51c   :  { %v269_v42 = vpop.f32.mrf.mxu0 }
 0x51d   :  { %v270_v45 = vadd.f32 %v1597_v40, %v269_v42 }
 0x522   :  { %v353_v44 = vpop.f32.mrf.mxu2 }
 0x523   :  { %v356_v46 = vadd.f32 %v353_v44, %v335_v43  ;;  %v482_v44 = vld [vmem:[%s1827_s0 + $0x18] sm:$0xff] }
 0x524   :  { %v294_v47 = vpop.f32.mrf.mxu1 }
 0x525   :  { %1323 = vtanh.f32 %v356_v46  ;;  %v297_v48 = vadd.f32 %v294_v47, %v270_v45  ;;  %v1264_v51 = vmul.f32 -1.442695, %v356_v46 }
 0x527   :  { %1325 = vtanh.f32 %v297_v48  ;;  %v1262_v52 = vmul.f32 -1.442695, %v297_v48 }
 0x528   :  { %1327 = vpow2.f32 %v1264_v51 }
 0x529   :  { %1329 = vpow2.f32 %v1262_v52 }
 0x52b   :  { %v1324_v49 = vpop.eup %1323 }
 0x52c   :  { %379 = vrot.lane.b32.xlu0 %v1324_v49, %s1429_s3 }
 0x52d   :  { %v1326_v50 = vpop.eup %1325 }
 0x52e   :  { %320 = vrot.lane.b32.xlu1 %v1326_v50, %s1429_s3  ;;  %v1328_v53 = vpop.eup %1327 }
 0x52f   :  { %v1330_v54 = vpop.eup %1329  ;;  %v360_v55 = vadd.f32 1.0, %v1328_v53 }
 0x530   :  { %v301_v56 = vadd.f32 1.0, %v1330_v54 }
 0x531   :  { %1331 = vrcp.f32 %v360_v55  ;;  %v372_v6 = vand.u32 2147483648, %v360_v55  ;;  %vm366_vm14 = vweird.f32 %v360_v55  ;;  %v370_v7 = vand.u32 2147483647, %v360_v55 }
 0x532   :  { %1333 = vrcp.f32 %v301_v56  ;;  %v313_v10 = vand.u32 2147483648, %v301_v56  ;;  %vm307_vm1 = vweird.f32 %v301_v56  ;;  %v311_v12 = vand.u32 2147483647, %v301_v56 }
 0x533   :  { %v373_v11 = vor.u32 1.1754944e-38, %v372_v6  ;;  %vm371_vm2 = vcmp.eq.f32.partialorder %v370_v7, 8.507059e+37 }
 0x534   :  { %v314_v17 = vor.u32 1.1754944e-38, %v313_v10  ;;  %vm312_vm5 = vcmp.eq.f32.partialorder %v311_v12, 8.507059e+37 }
 0x537   :  { %v1332_v57 = vpop.eup %1331 }
 0x538   :  { %v1334_v58 = vpop.eup %1333  ;;  %v362_v59 = vmul.f32 %v1332_v57, %v360_v55  ;;  %vm367_vm13 = vweird.f32 %v1332_v57 }
 0x539   :  { %v303_v60 = vmul.f32 %v1334_v58, %v301_v56  ;;  %vm368_vm15 = vmor %vm366_vm14, %vm367_vm13  ;;  %vm308_vm0 = vweird.f32 %v1334_v58 }
 0x53a   :  { %v363_v61 = vsub.f32 1.0, %v362_v59  ;;  %vm309_vm3 = vmor %vm307_vm1, %vm308_vm0 }
 0x53b   :  { %v304_v62 = vsub.f32 1.0, %v303_v60 }
 0x53c   :  { %v364_v63 = vmul.f32 %v1332_v57, %v363_v61 }
 0x53d   :  { %v305_v4 = vmul.f32 %v1334_v58, %v304_v62 }
 0x53e   :  { %v365_v5 = vadd.f32 %v1332_v57, %v364_v63 }
 0x53f   :  { %v306_v8 = vadd.f32 %v1334_v58, %v305_v4 }
 0x540   :  { %v369_v9 = vsel %vm368_vm15, %v1332_v57, %v365_v5 }
 0x541   :  { %v374_v13 = vsel %vm371_vm2, %v373_v11, %v369_v9  ;;  %v310_v15 = vsel %vm309_vm3, %v1334_v58, %v306_v8 }
 0x542   :  { %v315_v19 = vsel %vm312_vm5, %v314_v17, %v310_v15  ;;  %v377_v22 = vmul.f32 %v374_v13, %v1605_v21 }
 0x543   :  { %v318_v36 = vmul.f32 %v315_v19, %v1608_v25 }
 0x59e   :  { %v380_v14 = vpop.permute.xlu0 %379 }
 0x59f   :  { %v382_v16 = vmul.f32 %v380_v14, %v374_v13 }
 0x5a0   :  { %v321_v18 = vpop.permute.xlu1 %320 }
 0x5a1   :  { %384 = vrot.lane.b32.xlu2 %v382_v16, %s1430_s11  ;;  %v323_v20 = vmul.f32 %v321_v18, %v315_v19 }
 0x5a3   :  { %325 = vrot.lane.b32.xlu0 %v323_v20, %s1430_s11 }
 0x5fb   :  { %v385_v23 = vpop.permute.xlu2 %384 }
 0x5fc   :  { %v1639_v24 = vadd.f32 %v385_v23, %v377_v22 }
 0x5fe   :  { %1335 = vtanh.f32 %v1639_v24 }
 0x604   :  { %v1336_v27 = vpop.eup %1335 }
 0x605   :  { %390 = vrot.lane.b32.xlu1 %v1336_v27, %s1429_s3 }
 0x615   :  { %v326_v37 = vpop.permute.xlu0 %325 }
 0x616   :  { %v1644_v26 = vadd.f32 %v326_v37, %v318_v36 }
 0x618   :  { %1337 = vtanh.f32 %v1644_v26 }
 0x61e   :  { %v1338_v38 = vpop.eup %1337 }
 0x61f   :  { %331 = vrot.lane.b32.xlu2 %v1338_v38, %s1429_s3 }
 0x677   :  { %v391_v39 = vpop.permute.xlu1 %390 }
 0x678   :  { %v393_v21 = vmul.f32 %v391_v39, %v374_v13 }
 0x679   :  { %v332_v41 = vpop.permute.xlu2 %331 }
 0x67a   :  { %395 = vrot.lane.b32.xlu0 %v393_v21, %s1430_s11  ;;  %v334_v42 = vmul.f32 %v332_v41, %v315_v19 }
 0x67c   :  { %420 = vrot.lane.b32.xlu1 %v334_v42, %s1430_s11 }
 0x6ec   :  { %v396_v43 = vpop.permute.xlu0 %395 }
 0x6ed   :  { %1265 = vmatmul.msk.f32.vlgmr.msrb.gmra.mxu3 %vm40_vm4, %v396_v43  ;;  %1268 = vmatmul.msk.f32.vlgmr.msra.gmra.mxu1 %vm40_vm4, %v396_v43 }
 0x6ee   :  { %789 = vmatpush.msrb.mxu3 %v1474_v0  ;;  %877 = vmatpush.msra.mxu1 %v1511_v28  ;;  %v421_v25 = vpop.permute.xlu1 %420 }
 0x6ef   :  { %1266 = vmatmul.msk.f32.vlgmr.msra.gmra.mxu0 %vm40_vm4, %v421_v25 }
 0x6f0   :  { %790 = vmatpush.msrb.mxu3 %v1479_v1  ;;  %852 = vmatpush.msra.mxu0 %v1521_v30 }
 0x6f1   :  { %878 = vmatpush.msra.mxu1 %v1516_v29 }
 0x6f2   :  { %791 = vmatpush.msrb.mxu3 %v1486_v2  ;;  %853 = vmatpush.msra.mxu0 %v1528_v31 }
 0x6f3   :  { %879 = vmatpush.msra.mxu1 %v1533_v32 }
 0x6f4   :  { %792 = vmatpush.msrb.mxu3 %v1493_v3  ;;  %854 = vmatpush.msra.mxu0 %v1538_v33 }
 0x6f5   :  { %880 = vmatpush.msra.mxu1 %v1547_v34 }
 0x6f6   :  { %855 = vmatpush.msra.mxu0 %v1552_v35 }
 0x76a   :  { %v500_v45 = vpop.f32.mrf.mxu1 }
 0x76b   :  { %v503_v46 = vadd.f32 %v500_v45, %v482_v44 }
 0x76c   :  { %v441_v49 = vpop.f32.mrf.mxu0 }
 0x76d   :  { %1339 = vtanh.f32 %v503_v46  ;;  %v1269_v53 = vmul.f32 -1.442695, %v503_v46  ;;  %v629_v46 = vld [vmem:[%s1827_s0 + $0x20] sm:$0xff] }
 0x770   :  { %v416_v47 = vpop.f32.mrf.mxu3 }
 0x771   :  { %v417_v48 = vadd.f32 %v1597_v40, %v416_v47 }
 0x773   :  { %v1340_v50 = vpop.eup %1339  ;;  %v444_v51 = vadd.f32 %v441_v49, %v417_v48 }
 0x774   :  { %526 = vrot.lane.b32.xlu2 %v1340_v50, %s1429_s3 }
 0x775   :  { %1341 = vtanh.f32 %v444_v51  ;;  %v1267_v59 = vmul.f32 -1.442695, %v444_v51 }
 0x776   :  { %1343 = vpow2.f32 %v1269_v53 }
 0x77b   :  { %v1342_v52 = vpop.eup %1341 }
 0x77c   :  { %467 = vrot.lane.b32.xlu0 %v1342_v52, %s1429_s3  ;;  %v1344_v54 = vpop.eup %1343 }
 0x77d   :  { %v507_v55 = vadd.f32 1.0, %v1344_v54 }
 0x77f   :  { %1345 = vrcp.f32 %v507_v55  ;;  %v519_v62 = vand.u32 2147483648, %v507_v55  ;;  %vm513_vm7 = vweird.f32 %v507_v55  ;;  %v517_v63 = vand.u32 2147483647, %v507_v55 }
 0x780   :  { %1347 = vpow2.f32 %v1267_v59 }
 0x781   :  { %v520_v6 = vor.u32 1.1754944e-38, %v519_v62  ;;  %vm518_vm9 = vcmp.eq.f32.partialorder %v517_v63, 8.507059e+37 }
 0x785   :  { %v1346_v56 = vpop.eup %1345 }
 0x786   :  { %v509_v57 = vmul.f32 %v1346_v56, %v507_v55  ;;  %vm514_vm6 = vweird.f32 %v1346_v56  ;;  %v1348_v4 = vpop.eup %1347 }
 0x787   :  { %vm515_vm8 = vmor %vm513_vm7, %vm514_vm6  ;;  %v448_v7 = vadd.f32 1.0, %v1348_v4 }
 0x788   :  { %v510_v58 = vsub.f32 1.0, %v509_v57 }
 0x789   :  { %1349 = vrcp.f32 %v448_v7  ;;  %v460_v16 = vand.u32 2147483648, %v448_v7  ;;  %vm454_vm11 = vweird.f32 %v448_v7  ;;  %v458_v17 = vand.u32 2147483647, %v448_v7 }
 0x78a   :  { %v511_v60 = vmul.f32 %v1346_v56, %v510_v58 }
 0x78b   :  { %v461_v19 = vor.u32 1.1754944e-38, %v460_v16  ;;  %vm459_vm13 = vcmp.eq.f32.partialorder %v458_v17, 8.507059e+37 }
 0x78c   :  { %v512_v61 = vadd.f32 %v1346_v56, %v511_v60 }
 0x78e   :  { %v516_v5 = vsel %vm515_vm8, %v1346_v56, %v512_v61 }
 0x78f   :  { %v521_v9 = vsel %vm518_vm9, %v520_v6, %v516_v5  ;;  %v1350_v11 = vpop.eup %1349 }
 0x790   :  { %v450_v12 = vmul.f32 %v1350_v11, %v448_v7  ;;  %vm455_vm10 = vweird.f32 %v1350_v11  ;;  %v524_v27 = vmul.f32 %v521_v9, %v1639_v24 }
 0x791   :  { %vm456_vm12 = vmor %vm454_vm11, %vm455_vm10 }
 0x792   :  { %v451_v13 = vsub.f32 1.0, %v450_v12 }
 0x794   :  { %v452_v14 = vmul.f32 %v1350_v11, %v451_v13 }
 0x796   :  { %v453_v15 = vadd.f32 %v1350_v11, %v452_v14 }
 0x798   :  { %v457_v18 = vsel %vm456_vm12, %v1350_v11, %v453_v15 }
 0x799   :  { %v462_v22 = vsel %vm459_vm13, %v461_v19, %v457_v18 }
 0x79a   :  { %v465_v38 = vmul.f32 %v462_v22, %v1644_v26 }
 0x7ce   :  { %v527_v8 = vpop.permute.xlu2 %526 }
 0x7cf   :  { %v529_v10 = vmul.f32 %v527_v8, %v521_v9 }
 0x7d1   :  { %531 = vrot.lane.b32.xlu1 %v529_v10, %s1430_s11 }
 0x7ee   :  { %v468_v20 = vpop.permute.xlu0 %467 }
 0x7ef   :  { %v470_v23 = vmul.f32 %v468_v20, %v462_v22 }
 0x7f1   :  { %472 = vrot.lane.b32.xlu2 %v470_v23, %s1430_s11 }
 0x843   :  { %v532_v36 = vpop.permute.xlu1 %531 }
 0x844   :  { %v1674_v37 = vadd.f32 %v532_v36, %v524_v27 }
 0x846   :  { %1351 = vtanh.f32 %v1674_v37 }
 0x84b   :  { %v473_v39 = vpop.permute.xlu2 %472 }
 0x84c   :  { %v1352_v21 = vpop.eup %1351  ;;  %v1678_v41 = vadd.f32 %v473_v39, %v465_v38 }
 0x84d   :  { %537 = vrot.lane.b32.xlu0 %v1352_v21, %s1429_s3 }
 0x84e   :  { %1353 = vtanh.f32 %v1678_v41 }
 0x854   :  { %v1354_v42 = vpop.eup %1353 }
 0x855   :  { %478 = vrot.lane.b32.xlu1 %v1354_v42, %s1429_s3 }
 0x8bf   :  { %v538_v43 = vpop.permute.xlu0 %537 }
 0x8c0   :  { %v540_v24 = vmul.f32 %v538_v43, %v521_v9 }
 0x8c2   :  { %542 = vrot.lane.b32.xlu2 %v540_v24, %s1430_s11 }
 0x8c7   :  { %v479_v25 = vpop.permute.xlu1 %478 }
 0x8c8   :  { %v481_v44 = vmul.f32 %v479_v25, %v462_v22 }
 0x8ca   :  { %567 = vrot.lane.b32.xlu0 %v481_v44, %s1430_s11 }
 0x91c   :  { %v543_v26 = vpop.permute.xlu2 %542 }
 0x91d   :  { %1270 = vmatmul.msk.f32.vlgmr.msra.gmra.mxu2 %vm40_vm4, %v543_v26  ;;  %1273 = vmatmul.msk.f32.vlgmr.msrb.gmra.mxu0 %vm40_vm4, %v543_v26 }
 0x91e   :  { %936 = vmatpush.msra.mxu2 %v1474_v0  ;;  %1024 = vmatpush.msrb.mxu0 %v1511_v28 }
 0x920   :  { %937 = vmatpush.msra.mxu2 %v1479_v1  ;;  %1025 = vmatpush.msrb.mxu0 %v1516_v29 }
 0x922   :  { %938 = vmatpush.msra.mxu2 %v1486_v2  ;;  %1026 = vmatpush.msrb.mxu0 %v1533_v32 }
 0x924   :  { %939 = vmatpush.msra.mxu2 %v1493_v3  ;;  %1027 = vmatpush.msrb.mxu0 %v1547_v34 }
 0x93c   :  { %v568_v45 = vpop.permute.xlu0 %567 }
 0x93d   :  { %1271 = vmatmul.msk.f32.vlgmr.msra.gmra.mxu3 %vm40_vm4, %v568_v45 }
 0x93e   :  { %999 = vmatpush.msra.mxu3 %v1521_v30 }
 0x940   :  { %1000 = vmatpush.msra.mxu3 %v1528_v31 }
 0x942   :  { %1001 = vmatpush.msra.mxu3 %v1538_v33 }
 0x944   :  { %1002 = vmatpush.msra.mxu3 %v1552_v35 }
 0x99a   :  { %v647_v47 = vpop.f32.mrf.mxu0 }
 0x99b   :  { %v650_v48 = vadd.f32 %v647_v47, %v629_v46 }
 0x99d   :  { %1355 = vtanh.f32 %v650_v48  ;;  %v1274_v55 = vmul.f32 -1.442695, %v650_v48 }
 0x9a0   :  { %v563_v50 = vpop.f32.mrf.mxu2 }
 0x9a1   :  { %v564_v51 = vadd.f32 %v1597_v40, %v563_v50 }
 0x9a3   :  { %v1356_v49 = vpop.eup %1355 }
 0x9a4   :  { %673 = vrot.lane.b32.xlu1 %v1356_v49, %s1429_s3 }
 0x9c0   :  { %v588_v52 = vpop.f32.mrf.mxu3 }
 0x9c1   :  { %v591_v53 = vadd.f32 %v588_v52, %v564_v51 }
 0x9c3   :  { %1357 = vtanh.f32 %v591_v53  ;;  %v1272_v58 = vmul.f32 -1.442695, %v591_v53 }
 0x9c4   :  { %1359 = vpow2.f32 %v1274_v55 }
 0x9c9   :  { %v1358_v54 = vpop.eup %1357 }
 0x9ca   :  { %614 = vrot.lane.b32.xlu2 %v1358_v54, %s1429_s3  ;;  %v1360_v56 = vpop.eup %1359 }
 0x9cb   :  { %v654_v57 = vadd.f32 1.0, %v1360_v56 }
 0x9cd   :  { %1361 = vrcp.f32 %v654_v57  ;;  %v666_v7 = vand.u32 2147483648, %v654_v57  ;;  %vm660_vm15 = vweird.f32 %v654_v57  ;;  %v664_v8 = vand.u32 2147483647, %v654_v57 }
 0x9ce   :  { %1363 = vpow2.f32 %v1272_v58 }
 0x9cf   :  { %v667_v11 = vor.u32 1.1754944e-38, %v666_v7  ;;  %vm665_vm1 = vcmp.eq.f32.partialorder %v664_v8, 8.507059e+37 }
 0x9d3   :  { %v1362_v59 = vpop.eup %1361 }
 0x9d4   :  { %v1364_v60 = vpop.eup %1363  ;;  %v656_v61 = vmul.f32 %v1362_v59, %v654_v57  ;;  %vm661_vm14 = vweird.f32 %v1362_v59 }
 0x9d5   :  { %v595_v62 = vadd.f32 1.0, %v1364_v60  ;;  %vm662_vm0 = vmor %vm660_vm15, %vm661_vm14 }
 0x9d6   :  { %v657_v63 = vsub.f32 1.0, %v656_v61 }
 0x9d7   :  { %1365 = vrcp.f32 %v595_v62  ;;  %v607_v18 = vand.u32 2147483648, %v595_v62  ;;  %vm601_vm3 = vweird.f32 %v595_v62  ;;  %v605_v19 = vand.u32 2147483647, %v595_v62 }
 0x9d8   :  { %v658_v4 = vmul.f32 %v1362_v59, %v657_v63 }
 0x9d9   :  { %v608_v22 = vor.u32 1.1754944e-38, %v607_v18  ;;  %vm606_vm6 = vcmp.eq.f32.partialorder %v605_v19, 8.507059e+37 }
 0x9da   :  { %v659_v6 = vadd.f32 %v1362_v59, %v658_v4 }
 0x9dc   :  { %v663_v10 = vsel %vm662_vm0, %v1362_v59, %v659_v6 }
 0x9dd   :  { %v1366_v5 = vpop.eup %1365  ;;  %v668_v13 = vsel %vm665_vm1, %v667_v11, %v663_v10 }
 0x9de   :  { %v597_v9 = vmul.f32 %v1366_v5, %v595_v62  ;;  %vm602_vm2 = vweird.f32 %v1366_v5  ;;  %v671_v38 = vmul.f32 %v668_v13, %v1674_v37 }
 0x9df   :  { %vm603_vm5 = vmor %vm601_vm3, %vm602_vm2 }
 0x9e0   :  { %v598_v12 = vsub.f32 1.0, %v597_v9 }
 0x9e2   :  { %v599_v16 = vmul.f32 %v1366_v5, %v598_v12 }
 0x9e4   :  { %v600_v17 = vadd.f32 %v1366_v5, %v599_v16 }
 0x9e6   :  { %v604_v20 = vsel %vm603_vm5, %v1366_v5, %v600_v17 }
 0x9e7   :  { %v609_v27 = vsel %vm606_vm6, %v608_v22, %v604_v20 }
 0x9e8   :  { %v612_v43 = vmul.f32 %v609_v27, %v1678_v41 }
 0xa16   :  { %v674_v14 = vpop.permute.xlu1 %673 }
 0xa17   :  { %v676_v15 = vmul.f32 %v674_v14, %v668_v13 }
 0xa19   :  { %678 = vrot.lane.b32.xlu0 %v676_v15, %s1430_s11 }
 0xa24   :  { %v615_v23 = vpop.permute.xlu2 %614 }
 0xa25   :  { %v617_v36 = vmul.f32 %v615_v23, %v609_v27 }
 0xa27   :  { %619 = vrot.lane.b32.xlu1 %v617_v36, %s1430_s11 }
 0xa8b   :  { %v679_v39 = vpop.permute.xlu0 %678 }
 0xa8c   :  { %v1709_v21 = vadd.f32 %v679_v39, %v671_v38 }
 0xa8e   :  { %1367 = vtanh.f32 %v1709_v21 }
 0xa94   :  { %v1368_v42 = vpop.eup %1367 }
 0xa95   :  { %684 = vrot.lane.b32.xlu2 %v1368_v42, %s1429_s3 }
 0xa99   :  { %v620_v24 = vpop.permute.xlu1 %619 }
 0xa9a   :  { %v1714_v25 = vadd.f32 %v620_v24, %v612_v43  ;;  %v923_v43 = vld [vmem:[%s1827_s0 + $0x30] sm:$0xff] }
 0xa9c   :  { %1369 = vtanh.f32 %v1714_v25 }
 0xaa2   :  { %v1370_v44 = vpop.eup %1369 }
 0xaa3   :  { %625 = vrot.lane.b32.xlu0 %v1370_v44, %s1429_s3 }
 0xaef   :  { %v685_v26 = vpop.permute.xlu2 %684 }
 0xaf0   :  { %v687_v37 = vmul.f32 %v685_v26, %v668_v13 }
 0xaf2   :  { %689 = vrot.lane.b32.xlu1 %v687_v37, %s1430_s11 }
 0xb15   :  { %v626_v45 = vpop.permute.xlu0 %625 }
 0xb16   :  { %v628_v46 = vmul.f32 %v626_v45, %v609_v27 }
 0xb18   :  { %714 = vrot.lane.b32.xlu2 %v628_v46, %s1430_s11 }
 0xb64   :  { %v690_v47 = vpop.permute.xlu1 %689 }
 0xb65   :  { %1275 = vmatmul.msk.f32.vlgmr.msrb.gmra.mxu1 %vm40_vm4, %v690_v47  ;;  %1278 = vmatmul.msk.f32.vlgmr.msrb.gmra.mxu3 %vm40_vm4, %v690_v47 }
 0xb66   :  { %1083 = vmatpush.msrb.mxu1 %v1474_v0  ;;  %1171 = vmatpush.msrb.mxu3 %v1511_v28  ;;  %v776_v0 = vld [vmem:[%s1827_s0 + $0x28] sm:$0xff] }
 0xb68   :  { %1084 = vmatpush.msrb.mxu1 %v1479_v1  ;;  %1172 = vmatpush.msrb.mxu3 %v1516_v29 }
 0xb6a   :  { %1085 = vmatpush.msrb.mxu1 %v1486_v2  ;;  %1173 = vmatpush.msrb.mxu3 %v1533_v32 }
 0xb6c   :  { %1086 = vmatpush.msrb.mxu1 %v1493_v3  ;;  %1174 = vmatpush.msrb.mxu3 %v1547_v34 }
 0xb72   :  { %v715_v41 = vpop.permute.xlu2 %714 }
 0xb73   :  { %1276 = vmatmul.msk.f32.vlgmr.msrb.gmra.mxu2 %vm40_vm4, %v715_v41 }
 0xb74   :  { %1146 = vmatpush.msrb.mxu2 %v1521_v30 }
 0xb76   :  { %1147 = vmatpush.msrb.mxu2 %v1528_v31 }
 0xb78   :  { %1148 = vmatpush.msrb.mxu2 %v1538_v33 }
 0xb7a   :  { %1149 = vmatpush.msrb.mxu2 %v1552_v35 }
 0xbe2   :  { %v710_v28 = vpop.f32.mrf.mxu1 }
 0xbe3   :  { %v711_v29 = vadd.f32 %v1597_v40, %v710_v28 }
 0xbe8   :  { %v794_v1 = vpop.f32.mrf.mxu3 }
 0xbe9   :  { %v797_v2 = vadd.f32 %v794_v1, %v776_v0 }
 0xbeb   :  { %1371 = vtanh.f32 %v797_v2  ;;  %v1279_v33 = vmul.f32 -1.442695, %v797_v2 }
 0xbf1   :  { %v1372_v3 = vpop.eup %1371 }
 0xbf2   :  { %820 = vrot.lane.b32.xlu0 %v1372_v3, %s1429_s3 }
 0xbf6   :  { %v735_v30 = vpop.f32.mrf.mxu2 }
 0xbf7   :  { %v738_v32 = vadd.f32 %v735_v30, %v711_v29 }
 0xbf9   :  { %1373 = vtanh.f32 %v738_v32  ;;  %v1277_v48 = vmul.f32 -1.442695, %v738_v32 }
 0xbfa   :  { %1375 = vpow2.f32 %v1279_v33 }
 0xbff   :  { %v1374_v31 = vpop.eup %1373 }
 0xc00   :  { %761 = vrot.lane.b32.xlu1 %v1374_v31, %s1429_s3  ;;  %v1376_v34 = vpop.eup %1375 }
 0xc01   :  { %v801_v35 = vadd.f32 1.0, %v1376_v34 }
 0xc03   :  { %1377 = vrcp.f32 %v801_v35  ;;  %v813_v57 = vand.u32 2147483648, %v801_v35  ;;  %vm807_vm8 = vweird.f32 %v801_v35  ;;  %v811_v58 = vand.u32 2147483647, %v801_v35 }
 0xc04   :  { %1379 = vpow2.f32 %v1277_v48 }
 0xc05   :  { %v814_v61 = vor.u32 1.1754944e-38, %v813_v57  ;;  %vm812_vm10 = vcmp.eq.f32.partialorder %v811_v58, 8.507059e+37 }
 0xc09   :  { %v1378_v49 = vpop.eup %1377 }
 0xc0a   :  { %v1380_v50 = vpop.eup %1379  ;;  %v803_v51 = vmul.f32 %v1378_v49, %v801_v35  ;;  %vm808_vm7 = vweird.f32 %v1378_v49 }
 0xc0b   :  { %v742_v52 = vadd.f32 1.0, %v1380_v50  ;;  %vm809_vm9 = vmor %vm807_vm8, %vm808_vm7 }
 0xc0c   :  { %v804_v53 = vsub.f32 1.0, %v803_v51 }
 0xc0d   :  { %1381 = vrcp.f32 %v742_v52  ;;  %v754_v8 = vand.u32 2147483648, %v742_v52  ;;  %vm748_vm12 = vweird.f32 %v742_v52  ;;  %v752_v9 = vand.u32 2147483647, %v742_v52 }
 0xc0e   :  { %v805_v54 = vmul.f32 %v1378_v49, %v804_v53 }
 0xc0f   :  { %v755_v11 = vor.u32 1.1754944e-38, %v754_v8  ;;  %vm753_vm14 = vcmp.eq.f32.partialorder %v752_v9, 8.507059e+37 }
 0xc10   :  { %v806_v56 = vadd.f32 %v1378_v49, %v805_v54 }
 0xc12   :  { %v810_v60 = vsel %vm809_vm9, %v1378_v49, %v806_v56 }
 0xc13   :  { %v1382_v55 = vpop.eup %1381  ;;  %v815_v4 = vsel %vm812_vm10, %v814_v61, %v810_v60 }
 0xc14   :  { %v744_v59 = vmul.f32 %v1382_v55, %v742_v52  ;;  %vm749_vm11 = vweird.f32 %v1382_v55  ;;  %v818_v15 = vmul.f32 %v815_v4, %v1709_v21 }
 0xc15   :  { %vm750_vm13 = vmor %vm748_vm12, %vm749_vm11 }
 0xc16   :  { %v745_v62 = vsub.f32 1.0, %v744_v59 }
 0xc18   :  { %v746_v6 = vmul.f32 %v1382_v55, %v745_v62 }
 0xc1a   :  { %v747_v7 = vadd.f32 %v1382_v55, %v746_v6 }
 0xc1c   :  { %v751_v10 = vsel %vm750_vm13, %v1382_v55, %v747_v7 }
 0xc1d   :  { %v756_v13 = vsel %vm753_vm14, %v755_v11, %v751_v10 }
 0xc1e   :  { %v759_v19 = vmul.f32 %v756_v13, %v1714_v25 }
 0xc64   :  { %v821_v63 = vpop.permute.xlu0 %820 }
 0xc65   :  { %v823_v5 = vmul.f32 %v821_v63, %v815_v4 }
 0xc67   :  { %825 = vrot.lane.b32.xlu2 %v823_v5, %s1430_s11 }
 0xc72   :  { %v762_v12 = vpop.permute.xlu1 %761 }
 0xc73   :  { %v764_v14 = vmul.f32 %v762_v12, %v756_v13 }
 0xc75   :  { %766 = vrot.lane.b32.xlu0 %v764_v14, %s1430_s11 }
 0xcc1   :  { %v826_v16 = vpop.permute.xlu2 %825 }
 0xcc2   :  { %v1744_v17 = vadd.f32 %v826_v16, %v818_v15 }
 0xcc4   :  { %1383 = vtanh.f32 %v1744_v17 }
 0xcca   :  { %v1384_v18 = vpop.eup %1383 }
 0xccb   :  { %831 = vrot.lane.b32.xlu1 %v1384_v18, %s1429_s3  ;;  %v1070_v18 = vld [vmem:[%s1827_s0 + $0x38] sm:$0xff] }
 0xce7   :  { %v767_v20 = vpop.permute.xlu0 %766 }
 0xce8   :  { %v1749_v22 = vadd.f32 %v767_v20, %v759_v19 }
 0xcea   :  { %1385 = vtanh.f32 %v1749_v22 }
 0xcf0   :  { %v1386_v23 = vpop.eup %1385 }
 0xcf1   :  { %772 = vrot.lane.b32.xlu2 %v1386_v23, %s1429_s3 }
 0xd3d   :  { %v832_v27 = vpop.permute.xlu1 %831 }
 0xd3e   :  { %v834_v36 = vmul.f32 %v832_v27, %v815_v4  ;;  %v1788_v27 = vld [vmem:[%s1830_s2] ss:$0 sm:$0xff] }
 0xd40   :  { %836 = vrot.lane.b32.xlu0 %v834_v36, %s1430_s11 }
 0xd4b   :  { %v773_v38 = vpop.permute.xlu2 %772 }
 0xd4c   :  { %v775_v39 = vmul.f32 %v773_v38, %v756_v13 }
 0xd4e   :  { %861 = vrot.lane.b32.xlu1 %v775_v39, %s1430_s11 }
 0xdb2   :  { %v837_v21 = vpop.permute.xlu0 %836 }
 0xdb3   :  { %1280 = vmatmul.msk.f32.vlgmr.msra.gmra.mxu0 %vm40_vm4, %v837_v21  ;;  %1283 = vmatmul.msk.f32.vlgmr.msra.gmra.mxu2 %vm40_vm4, %v837_v21 }
 0xdc0   :  { %v862_v42 = vpop.permute.xlu1 %861 }
 0xdc1   :  { %1281 = vmatmul.msk.f32.vlgmr.msra.gmra.mxu1 %vm40_vm4, %v862_v42 }
 0xe30   :  { %v857_v44 = vpop.f32.mrf.mxu0 }
 0xe31   :  { %v858_v26 = vadd.f32 %v1597_v40, %v857_v44 }
 0xe36   :  { %v941_v24 = vpop.f32.mrf.mxu2 }
 0xe37   :  { %v944_v25 = vadd.f32 %v941_v24, %v923_v43 }
 0xe39   :  { %1387 = vtanh.f32 %v944_v25  ;;  %v1284_v41 = vmul.f32 -1.442695, %v944_v25 }
 0xe3e   :  { %v882_v37 = vpop.f32.mrf.mxu1 }
 0xe3f   :  { %v1388_v45 = vpop.eup %1387  ;;  %v885_v46 = vadd.f32 %v882_v37, %v858_v26 }
 0xe40   :  { %967 = vrot.lane.b32.xlu2 %v1388_v45, %s1429_s3 }
 0xe41   :  { %1389 = vtanh.f32 %v885_v46  ;;  %v1282_v29 = vmul.f32 -1.442695, %v885_v46 }
 0xe42   :  { %1391 = vpow2.f32 %v1284_v41 }
 0xe47   :  { %v1390_v47 = vpop.eup %1389 }
 0xe48   :  { %908 = vrot.lane.b32.xlu0 %v1390_v47, %s1429_s3  ;;  %v1392_v0 = vpop.eup %1391 }
 0xe49   :  { %v948_v1 = vadd.f32 1.0, %v1392_v0 }
 0xe4b   :  { %1393 = vrcp.f32 %v948_v1  ;;  %v960_v32 = vand.u32 2147483648, %v948_v1  ;;  %vm954_vm0 = vweird.f32 %v948_v1  ;;  %v958_v31 = vand.u32 2147483647, %v948_v1 }
 0xe4c   :  { %1395 = vpow2.f32 %v1282_v29 }
 0xe4d   :  { %v961_v35 = vor.u32 1.1754944e-38, %v960_v32  ;;  %vm959_vm2 = vcmp.eq.f32.partialorder %v958_v31, 8.507059e+37 }
 0xe51   :  { %v1394_v2 = vpop.eup %1393 }
 0xe52   :  { %v950_v3 = vmul.f32 %v1394_v2, %v948_v1  ;;  %vm955_vm15 = vweird.f32 %v1394_v2  ;;  %v1396_v33 = vpop.eup %1395 }
 0xe53   :  { %vm956_vm1 = vmor %vm954_vm0, %vm955_vm15  ;;  %v889_v48 = vadd.f32 1.0, %v1396_v33 }
 0xe54   :  { %v951_v28 = vsub.f32 1.0, %v950_v3 }
 0xe55   :  { %1397 = vrcp.f32 %v889_v48  ;;  %v901_v57 = vand.u32 2147483648, %v889_v48  ;;  %vm895_vm5 = vweird.f32 %v889_v48  ;;  %v899_v58 = vand.u32 2147483647, %v889_v48 }
 0xe56   :  { %v952_v30 = vmul.f32 %v1394_v2, %v951_v28 }
 0xe57   :  { %v902_v60 = vor.u32 1.1754944e-38, %v901_v57  ;;  %vm900_vm7 = vcmp.eq.f32.partialorder %v899_v58, 8.507059e+37 }
 0xe58   :  { %v953_v40 = vadd.f32 %v1394_v2, %v952_v30 }
 0xe5a   :  { %v957_v34 = vsel %vm956_vm1, %v1394_v2, %v953_v40 }
 0xe5b   :  { %v962_v49 = vsel %vm959_vm2, %v961_v35, %v957_v34  ;;  %v1398_v52 = vpop.eup %1397 }
 0xe5c   :  { %v891_v53 = vmul.f32 %v1398_v52, %v889_v48  ;;  %vm896_vm3 = vweird.f32 %v1398_v52  ;;  %v965_v4 = vmul.f32 %v962_v49, %v1744_v17 }
 0xe5d   :  { %vm897_vm6 = vmor %vm895_vm5, %vm896_vm3 }
 0xe5e   :  { %v892_v54 = vsub.f32 1.0, %v891_v53 }
 0xe60   :  { %v893_v55 = vmul.f32 %v1398_v52, %v892_v54 }
 0xe62   :  { %v894_v56 = vadd.f32 %v1398_v52, %v893_v55 }
 0xe64   :  { %v898_v59 = vsel %vm897_vm6, %v1398_v52, %v894_v56 }
 0xe65   :  { %v903_v62 = vsel %vm900_vm7, %v902_v60, %v898_v59 }
 0xe66   :  { %v906_v7 = vmul.f32 %v903_v62, %v1749_v22 }
 0xe9a   :  { %v968_v50 = vpop.permute.xlu2 %967 }
 0xe9b   :  { %v970_v51 = vmul.f32 %v968_v50, %v962_v49 }
 0xe9d   :  { %972 = vrot.lane.b32.xlu1 %v970_v51, %s1430_s11 }
 0xeba   :  { %v909_v61 = vpop.permute.xlu0 %908 }
 0xebb   :  { %v911_v63 = vmul.f32 %v909_v61, %v903_v62 }
 0xebd   :  { %913 = vrot.lane.b32.xlu2 %v911_v63, %s1430_s11 }
 0xf0f   :  { %v973_v5 = vpop.permute.xlu1 %972 }
 0xf10   :  { %v1767_v6 = vadd.f32 %v973_v5, %v965_v4 }
 0xf12   :  { %1399 = vtanh.f32 %v1767_v6 }
 0xf17   :  { %v914_v8 = vpop.permute.xlu2 %913 }
 0xf18   :  { %v1400_v9 = vpop.eup %1399  ;;  %v1771_v10 = vadd.f32 %v914_v8, %v906_v7 }
 0xf19   :  { %978 = vrot.lane.b32.xlu0 %v1400_v9, %s1429_s3 }
 0xf1a   :  { %1401 = vtanh.f32 %v1771_v10 }
 0xf20   :  { %v1402_v11 = vpop.eup %1401 }
 0xf21   :  { %919 = vrot.lane.b32.xlu1 %v1402_v11, %s1429_s3 }
 0xf8b   :  { %v979_v12 = vpop.permute.xlu0 %978 }
 0xf8c   :  { %v981_v13 = vmul.f32 %v979_v12, %v962_v49 }
 0xf8e   :  { %983 = vrot.lane.b32.xlu2 %v981_v13, %s1430_s11 }
 0xf93   :  { %v920_v14 = vpop.permute.xlu1 %919 }
 0xf94   :  { %v922_v15 = vmul.f32 %v920_v14, %v903_v62 }
 0xf96   :  { %1008 = vrot.lane.b32.xlu0 %v922_v15, %s1430_s11 }
 0xfe8   :  { %v984_v16 = vpop.permute.xlu2 %983 }
 0xfe9   :  { %1285 = vmatmul.msk.f32.vlgmr.msra.gmra.mxu3 %vm40_vm4, %v984_v16  ;;  %1288 = vmatmul.msk.f32.vlgmr.msrb.gmra.mxu1 %vm40_vm4, %v984_v16 }
0x1008   :  { %v1009_v17 = vpop.permute.xlu0 %1008 }
0x1009   :  { %1286 = vmatmul.msk.f32.vlgmr.msrb.gmra.mxu0 %vm40_vm4, %v1009_v17 }
0x1066   :  { %v1088_v19 = vpop.f32.mrf.mxu1 }
0x1067   :  { %v1091_v20 = vadd.f32 %v1088_v19, %v1070_v18 }
0x1069   :  { %1403 = vtanh.f32 %v1091_v20  ;;  %v1289_v42 = vmul.f32 -1.442695, %v1091_v20 }
0x106c   :  { %v1004_v23 = vpop.f32.mrf.mxu3 }
0x106d   :  { %v1005_v36 = vadd.f32 %v1788_v27, %v1004_v23 }
0x106f   :  { %v1404_v22 = vpop.eup %1403 }
0x1070   :  { %1114 = vrot.lane.b32.xlu1 %v1404_v22, %s1429_s3 }
0x1086   :  { %v1029_v38 = vpop.f32.mrf.mxu0 }
0x1087   :  { %v1032_v39 = vadd.f32 %v1029_v38, %v1005_v36 }
0x1089   :  { %1405 = vtanh.f32 %v1032_v39  ;;  %v1287_v43 = vmul.f32 -1.442695, %v1032_v39 }
0x108a   :  { %1407 = vpow2.f32 %v1289_v42 }
0x108b   :  { %1409 = vpow2.f32 %v1287_v43 }
0x108f   :  { %v1406_v21 = vpop.eup %1405 }
0x1090   :  { %1055 = vrot.lane.b32.xlu2 %v1406_v21, %s1429_s3  ;;  %v1408_v24 = vpop.eup %1407 }
0x1091   :  { %v1095_v25 = vadd.f32 1.0, %v1408_v24  ;;  %v1410_v44 = vpop.eup %1409 }
0x1092   :  { %v1036_v26 = vadd.f32 1.0, %v1410_v44  ;;  %v1220_v44 = vld [vmem:[%s1831_s5 + $0x18] sm:$0xff] }
0x1093   :  { %1411 = vrcp.f32 %v1095_v25  ;;  %v1107_v3 = vand.u32 2147483648, %v1095_v25  ;;  %vm1101_vm9 = vweird.f32 %v1095_v25  ;;  %v1105_v28 = vand.u32 2147483647, %v1095_v25  ;;  %1242 = vmatpush.msra.mxu0 %v1220_v44 }
0x1094   :  { %1413 = vrcp.f32 %v1036_v26  ;;  %v1048_v35 = vand.u32 2147483648, %v1036_v26  ;;  %vm1042_vm13 = vweird.f32 %v1036_v26  ;;  %v1046_v48 = vand.u32 2147483647, %v1036_v26 }
0x1095   :  { %v1108_v40 = vor.u32 1.1754944e-38, %v1107_v3  ;;  %vm1106_vm11 = vcmp.eq.f32.partialorder %v1105_v28, 8.507059e+37 }
0x1096   :  { %v1049_v50 = vor.u32 1.1754944e-38, %v1048_v35  ;;  %vm1047_vm15 = vcmp.eq.f32.partialorder %v1046_v48, 8.507059e+37 }
0x1099   :  { %v1412_v37 = vpop.eup %1411 }
0x109a   :  { %v1097_v45 = vmul.f32 %v1412_v37, %v1095_v25  ;;  %v1414_v47 = vpop.eup %1413  ;;  %vm1102_vm8 = vweird.f32 %v1412_v37 }
0x109b   :  { %v1038_v0 = vmul.f32 %v1414_v47, %v1036_v26  ;;  %vm1103_vm10 = vmor %vm1101_vm9, %vm1102_vm8  ;;  %vm1043_vm12 = vweird.f32 %v1414_v47  ;;  %v1219_v26 = vld [vmem:[%s1831_s5 + $0x10] sm:$0xff] }
0x109c   :  { %v1098_v46 = vsub.f32 1.0, %v1097_v45  ;;  %vm1044_vm14 = vmor %vm1042_vm13, %vm1043_vm12  ;;  %1243 = vmatpush.msra.mxu0 %v1219_v26  ;;  %v1217_v45 = vld [vmem:[%s1831_s5] sm:$0xff] }
0x109d   :  { %v1039_v2 = vsub.f32 1.0, %v1038_v0  ;;  %v1298_v0 = vld [vmem:[%s1832_s6] ss:$0 sm:$0xff] }
0x109e   :  { %v1099_v41 = vmul.f32 %v1412_v37, %v1098_v46 }
0x109f   :  { %v1040_v30 = vmul.f32 %v1414_v47, %v1039_v2 }
0x10a0   :  { %v1100_v1 = vadd.f32 %v1412_v37, %v1099_v41 }
0x10a1   :  { %v1041_v34 = vadd.f32 %v1414_v47, %v1040_v30 }
0x10a2   :  { %v1104_v29 = vsel %vm1103_vm10, %v1412_v37, %v1100_v1  ;;  %v1218_v37 = vld [vmem:[%s1831_s5 + $0x8] sm:$0xff] }
0x10a3   :  { %v1109_v31 = vsel %vm1106_vm11, %v1108_v40, %v1104_v29  ;;  %v1045_v49 = vsel %vm1044_vm14, %v1414_v47, %v1041_v34  ;;  %1244 = vmatpush.msra.mxu0 %v1218_v37 }
0x10a4   :  { %v1050_v52 = vsel %vm1047_vm15, %v1049_v50, %v1045_v49  ;;  %v1112_v54 = vmul.f32 %v1109_v31, %v1767_v6 }
0x10a5   :  { %v1053_v57 = vmul.f32 %v1050_v52, %v1771_v10  ;;  %1245 = vmatpush.msra.mxu0 %v1217_v45 }
0x10e2   :  { %v1115_v32 = vpop.permute.xlu1 %1114 }
0x10e3   :  { %v1117_v33 = vmul.f32 %v1115_v32, %v1109_v31 }
0x10e5   :  { %1119 = vrot.lane.b32.xlu0 %v1117_v33, %s1430_s11 }
0x10ea   :  { %v1056_v51 = vpop.permute.xlu2 %1055 }
0x10eb   :  { %v1058_v53 = vmul.f32 %v1056_v51, %v1050_v52 }
0x10ed   :  { %1060 = vrot.lane.b32.xlu1 %v1058_v53, %s1430_s11 }
0x1157   :  { %v1120_v55 = vpop.permute.xlu0 %1119 }
0x1158   :  { %v1122_v56 = vadd.f32 %v1120_v55, %v1112_v54 }
0x115a   :  { %1415 = vtanh.f32 %v1122_v56 }
0x115f   :  { %v1061_v58 = vpop.permute.xlu1 %1060 }
0x1160   :  { %v1416_v59 = vpop.eup %1415  ;;  %v1063_v60 = vadd.f32 %v1061_v58, %v1053_v57 }
0x1161   :  { %1125 = vrot.lane.b32.xlu2 %v1416_v59, %s1429_s3 }
0x1162   :  { %1417 = vtanh.f32 %v1063_v60 }
0x1168   :  { %v1418_v61 = vpop.eup %1417 }
0x1169   :  { %1066 = vrot.lane.b32.xlu0 %v1418_v61, %s1429_s3 }
0x11bb   :  { %v1126_v62 = vpop.permute.xlu2 %1125 }
0x11bc   :  { %v1128_v63 = vmul.f32 %v1126_v62, %v1109_v31 }
0x11be   :  { %1130 = vrot.lane.b32.xlu1 %v1128_v63, %s1430_s11 }
0x11db   :  { %v1067_v4 = vpop.permute.xlu0 %1066 }
0x11dc   :  { %v1069_v5 = vmul.f32 %v1067_v4, %v1050_v52 }
0x11de   :  { %1155 = vrot.lane.b32.xlu2 %v1069_v5, %s1430_s11 }
0x1230   :  { %v1131_v6 = vpop.permute.xlu1 %1130 }
0x1231   :  { %1290 = vmatmul.msk.f32.vlgmr.msrb.gmra.mxu2 %vm40_vm4, %v1131_v6 }
0x1238   :  { %v1156_v7 = vpop.permute.xlu2 %1155 }
0x1239   :  { %1291 = vmatmul.msk.f32.vlgmr.msrb.gmra.mxu3 %vm40_vm4, %v1156_v7 }
0x12b4   :  { %v1151_v8 = vpop.f32.mrf.mxu2 }
0x12b5   :  { %v1152_v9 = vadd.f32 %v1788_v27, %v1151_v8 }
0x12bc   :  { %v1176_v10 = vpop.f32.mrf.mxu3 }
0x12bd   :  { %v1179_v11 = vadd.f32 %v1176_v10, %v1152_v9 }
0x12bf   :  { %1419 = vtanh.f32 %v1179_v11  ;;  %v1292_v13 = vmul.f32 -1.442695, %v1179_v11 }
0x12c1   :  { %1421 = vpow2.f32 %v1292_v13 }
0x12c5   :  { %v1420_v12 = vpop.eup %1419 }
0x12c6   :  { %1202 = vrot.lane.b32.xlu0 %v1420_v12, %s1429_s3 }
0x12c7   :  { %v1422_v14 = vpop.eup %1421 }
0x12c8   :  { %v1183_v15 = vadd.f32 1.0, %v1422_v14 }
0x12ca   :  { %1423 = vrcp.f32 %v1183_v15  ;;  %v1195_v22 = vand.u32 2147483648, %v1183_v15  ;;  %vm1189_vm1 = vweird.f32 %v1183_v15  ;;  %v1193_v23 = vand.u32 2147483647, %v1183_v15 }
0x12cc   :  { %v1196_v36 = vor.u32 1.1754944e-38, %v1195_v22  ;;  %vm1194_vm3 = vcmp.eq.f32.partialorder %v1193_v23, 8.507059e+37 }
0x12d0   :  { %v1424_v16 = vpop.eup %1423 }
0x12d1   :  { %v1185_v17 = vmul.f32 %v1424_v16, %v1183_v15  ;;  %vm1190_vm0 = vweird.f32 %v1424_v16 }
0x12d2   :  { %vm1191_vm2 = vmor %vm1189_vm1, %vm1190_vm0 }
0x12d3   :  { %v1186_v18 = vsub.f32 1.0, %v1185_v17 }
0x12d5   :  { %v1187_v19 = vmul.f32 %v1424_v16, %v1186_v18 }
0x12d7   :  { %v1188_v20 = vadd.f32 %v1424_v16, %v1187_v19 }
0x12d9   :  { %v1192_v27 = vsel %vm1191_vm2, %v1424_v16, %v1188_v20 }
0x12da   :  { %v1197_v39 = vsel %vm1194_vm3, %v1196_v36, %v1192_v27 }
0x12db   :  { %v1200_v42 = vmul.f32 %v1197_v39, %v1063_v60 }
0x1338   :  { %v1203_v38 = vpop.permute.xlu0 %1202 }
0x1339   :  { %v1205_v21 = vmul.f32 %v1203_v38, %v1197_v39 }
0x133b   :  { %1207 = vrot.lane.b32.xlu1 %v1205_v21, %s1430_s11 }
0x13ad   :  { %v1208_v43 = vpop.permute.xlu1 %1207 }
0x13ae   :  { %v1210_v24 = vadd.f32 %v1208_v43, %v1200_v42 }
0x13b0   :  { %1425 = vtanh.f32 %v1210_v24 }
0x13b6   :  { %v1426_v25 = vpop.eup %1425 }
0x13b7   :  { %1213 = vrot.lane.b32.xlu2 %v1426_v25, %s1429_s3 }
0x1411   :  { %v1214_v46 = vpop.permute.xlu2 %1213 }
0x1412   :  { %v1216_v47 = vmul.f32 %v1214_v46, %v1197_v39 }
0x1414   :  { %1226 = vrot.lane.b32.xlu0 %v1216_v47, %s1430_s11 }
0x1486   :  { %v1227_v41 = vpop.permute.xlu0 %1226 }
0x1487   :  { %1293 = vmatmul.msk.f32.vlgmr.msra.gmra.mxu0 %vm40_vm4, %v1227_v41 }
0x1504   :  { %v1247_v1 = vpop.f32.mrf.mxu0 }
0x1505   :  { %v1248_v2 = vadd.f32 %v1298_v0, %v1247_v1 }
0x1507   :  { %1250 = vst [vmem:[%s1833_s7] sm:$0xff] %v1248_v2 }

</bundles_post_ra>
